<compile_context>
chip_gen: v7x
topology: tpu7x:2x2x1
jax: 0.10.0
libtpu: 0.0.40
codegen_flags: <defaults>
</compile_context>

<pallas_src>
import functools

import jax
import jax.numpy as jnp
from jax.experimental import pallas as pl
from jax.experimental.pallas import tpu as pltpu


def _cnn1d_kernel(x_ref, w1_ref, b1_ref, w2_ref, b2_ref,
                  wf1_ref, bf1_ref, wf2_ref, bf2_ref,
                  o_ref, *, L, Bt):
    L2 = L // 2
    L4 = L // 4
    mxu_dtype = w2_ref.dtype            # bf16 by default, f32 for exact check

    # x_ref block: (1, L+2, Bt, 1) -- time leading, batch on sublanes, the
    # trailing 1 broadcasts across the 128 channel lanes.
    x = x_ref[0]                                            # (L+2, Bt, 1)

    # ---- conv1 (Cin=1 -> 128, k=3, pad=1) + ReLU (pure VPU, f32) ----
    # Bias and tap 0 folded into the init; only taps 1,2 accumulate.
    h1 = x[0:L] * w1_ref[0:1, :] + b1_ref[...]              # (L, Bt, 128)
    for k in (1, 2):
        h1 = h1 + x[k:k + L] * w1_ref[k:k + 1, :]
    h1 = jnp.maximum(h1, 0.0)

    # ---- maxpool k=2 over time (in-register, leading-axis reshape) ----
    p1 = jnp.max(h1.reshape(L2, 2, Bt, 128), axis=1)        # (L2, Bt, 128)

    # ---- conv2 (128 -> 64, k=3, pad=1) + ReLU as one MXU matmul ----
    zrow = jnp.zeros((1, Bt, 128), jnp.float32)
    p1p = jnp.concatenate([zrow, p1, zrow], axis=0)         # (L2+2, Bt, 128)
    patches = jnp.concatenate(
        [p1p[k:k + L2] for k in range(3)], axis=2)          # (L2, Bt, 384)
    patches2d = patches.reshape(L2 * Bt, 3 * 128).astype(mxu_dtype)
    h2 = jnp.dot(patches2d, w2_ref[...],
                 preferred_element_type=jnp.float32)        # (L2*Bt, 64)
    h2 = jnp.maximum(h2 + b2_ref[...], 0.0).reshape(L2, Bt, 64)

    # ---- maxpool k=2 ----
    p2 = jnp.max(h2.reshape(L4, 2, Bt, 64), axis=1)         # (L4, Bt, 64)

    # ---- fc1 + ReLU: single M=Bt, K=L4*64 MXU matmul ----
    # torch flatten order (c*L4 + t) is folded host-side into wf1 rows
    # (row = t*64 + c), so the kernel just flattens p2 (t,c)-major.
    p2t = jnp.transpose(p2, (1, 0, 2)).reshape(Bt, L4 * 64)  # (Bt, L4*64) f32
    z = jnp.dot(p2t.astype(mxu_dtype), wf1_ref[...],
                preferred_element_type=jnp.float32)          # (Bt, 64)
    z = jnp.maximum(z + bf1_ref[...], 0.0)
    # TODO(synk): nn.Dropout(0.5) is identity in eval mode; no RNG mask applied.

    # ---- fc2 ----
    o_ref[...] = (jnp.dot(z.astype(mxu_dtype), wf2_ref[...],
                          preferred_element_type=jnp.float32)
                  + bf2_ref[...])                            # (Bt, 2)


def cnn1d_forward(x, params, *, batch_tile=None, use_bf16=True):
    B, L = x.shape
    assert L % 4 == 0
    L4 = L // 4
    (c1w, c1b, c2w, c2b, f1w, f1b, f2w, f2b) = params

    # Batch tile: fat enough to amortize per-step overhead and fill MXU rows
    # (conv2 M = L2*Bt), but keep nb >= 2 when B allows so v7x's two
    # TensorCores both get a "parallel" grid step.  Override per generation.
    if batch_tile is not None:
        Bt = batch_tile
    elif B <= 16:
        Bt = 8          # B<=8: one step; 8<B<=16: nb=2 (v7x gets both TCs)
    elif B <= 32:
        Bt = 16         # nb=2, conv2 M = 16*L2
    else:
        Bt = 32         # nb>=2, conv2 M = 32*L2 (two full 256-row passes)
    nb = -(-B // Bt)
    B_pad = nb * Bt

    mxu_dtype = jnp.bfloat16 if use_bf16 else jnp.float32

    # Host-side weight re-layout (glue only, no compute).
    w1 = jnp.transpose(c1w[:, 0, :], (1, 0))                   # (3,128) f32 (VPU)
    b1 = c1b.reshape(1, 128)
    w2 = (jnp.transpose(c2w, (2, 1, 0))
          .reshape(3 * 128, 64).astype(mxu_dtype))             # (384,64): [k*128+c, o]
    b2 = c2b.reshape(1, 64)
    # fc1: torch column index is c*L4 + t; kernel row index is t*64 + c.
    wf1 = (jnp.transpose(f1w.reshape(64, 64, L4), (2, 1, 0))
           .reshape(L4 * 64, 64).astype(mxu_dtype))            # (L4*64, 64)
    bf1 = f1b.reshape(1, 64)
    wf2 = jnp.transpose(f2w, (1, 0)).astype(mxu_dtype)         # (64, 2)
    bf2 = f2b.reshape(1, 2)

    # Pad batch to a multiple of Bt (padded rows compute garbage, sliced off),
    # add the conv halo, lay out as (nb, L+2, Bt, 1): time leading, batch on
    # sublanes.
    xpad = jnp.pad(x, ((0, B_pad - B), (1, 1)))                # (B_pad, L+2)
    x4 = xpad.reshape(nb, Bt, L + 2).transpose(0, 2, 1)[..., None]

    kernel = functools.partial(_cnn1d_kernel, L=L, Bt=Bt)

    def full(shape):
        return pl.BlockSpec(shape, lambda g: (0,) * len(shape))

    out = pl.pallas_call(
        kernel,
        out_shape=jax.ShapeDtypeStruct((B_pad, 2), jnp.float32),
        grid_spec=pltpu.PrefetchScalarGridSpec(
            num_scalar_prefetch=0,
            grid=(nb,),
            in_specs=[
                pl.BlockSpec((1, L + 2, Bt, 1), lambda g: (g, 0, 0, 0)),
                full((3, 128)), full((1, 128)),
                full((3 * 128, 64)), full((1, 64)),
                full((L4 * 64, 64)), full((1, 64)),
                full((64, 2)), full((1, 2)),
            ],
            out_specs=pl.BlockSpec((Bt, 2), lambda g: (g, 0)),
        ),
        compiler_params=pltpu.CompilerParams(
            dimension_semantics=("parallel",)),
    )(x4, w1, b1, w2, b2, wf1, bf1, wf2, bf2)
    return out[:B]


def ref_forward(x, params):
    """Pure-JAX reference reproducing the PyTorch forward (eval mode, f32)."""
    (c1w, c1b, c2w, c2b, f1w, f1b, f2w, f2b) = params
    B, L = x.shape
    xp = jnp.pad(x, ((0, 0), (1, 1)))
    patches1 = jnp.stack([xp[:, k:k + L] for k in range(3)], axis=-1)      # (B,L,3)
    h1 = jnp.einsum('btk,ck->bct', patches1, c1w[:, 0, :]) + c1b[None, :, None]
    h1 = jnp.maximum(h1, 0.0)
    h1 = h1.reshape(B, 128, L // 2, 2).max(axis=-1)
    hp = jnp.pad(h1, ((0, 0), (0, 0), (1, 1)))
    patches2 = jnp.stack([hp[:, :, k:k + L // 2] for k in range(3)], axis=-1)
    h2 = jnp.einsum('bctk,ock->bot', patches2, c2w) + c2b[None, :, None]
    h2 = jnp.maximum(h2, 0.0)
    h2 = h2.reshape(B, 64, L // 4, 2).max(axis=-1)
    flat = h2.reshape(B, -1)                                               # c*L4 + t
    z = jnp.maximum(flat @ f1w.T + f1b, 0.0)
    return z @ f2w.T + f2b


if __name__ == "__main__":
    embedding_dim = 32     # L; fc1 input = 64 * (32 // 2 // 2) = 512
    B = 2
    key = jax.random.PRNGKey(0)
    ks = jax.random.split(key, 9)

    def u(k, shape, fan_in):
        a = 1.0 / jnp.sqrt(jnp.float32(fan_in))
        return jax.random.uniform(k, shape, jnp.float32, -a, a)

    fc1_in = 64 * (embedding_dim // 2 // 2)
    params = (
        u(ks[0], (128, 1, 3), 1 * 3),   u(ks[1], (128,), 1 * 3),      # conv1
        u(ks[2], (64, 128, 3), 128 * 3), u(ks[3], (64,), 128 * 3),    # conv2
        u(ks[4], (64, fc1_in), fc1_in),  u(ks[5], (64,), fc1_in),     # fc1
        u(ks[6], (2, 64), 64),           u(ks[7], (2,), 64),          # fc2
    )
    x = jax.random.normal(ks[8], (B, embedding_dim), jnp.float32)

    ref = ref_forward(x, params)

    # Exact-layout check with f32 matmul operands (tight tolerance).
    out_f32 = jax.block_until_ready(cnn1d_forward(x, params, use_bf16=False))
    assert out_f32.shape == (B, 2)
    assert jnp.allclose(out_f32, ref, atol=1e-4, rtol=1e-4), (out_f32, ref)

    # Default fast path: bf16 MXU operands, f32 accumulate (looser tolerance
    # for bf16 operand rounding, ~1e-3 relative).
    out = jax.block_until_ready(cnn1d_forward(x, params))
    assert out.shape == (B, 2)
    assert jnp.allclose(out, ref, atol=5e-2, rtol=5e-2), (out, ref)

    print("KERNEL_OK")
</pallas_src>

<mosaic_0001>
module attributes {stable_mosaic.version = 11 : i64} {
  func.func @_cnn1d_kernel(%arg0: i32, %arg1: memref<1x34x8x1xf32, #tpu.memory_space<vmem>>, %arg2: memref<3x128xf32, #tpu.memory_space<vmem>>, %arg3: memref<1x128xf32, #tpu.memory_space<vmem>>, %arg4: memref<384x64xf32, #tpu.memory_space<vmem>>, %arg5: memref<1x64xf32, #tpu.memory_space<vmem>>, %arg6: memref<512x64xf32, #tpu.memory_space<vmem>>, %arg7: memref<1x64xf32, #tpu.memory_space<vmem>>, %arg8: memref<64x2xf32, #tpu.memory_space<vmem>>, %arg9: memref<1x2xf32, #tpu.memory_space<vmem>>, %arg10: memref<8x2xf32, #tpu.memory_space<vmem>>) attributes {dimension_semantics = [#tpu.dimension_semantics<parallel>], iteration_bounds = array<i64: 1>, scalar_prefetch = 0 : i64, scratch_operands = 0 : i64, tpu.core_type = #tpu.core_type<tc>, window_params = [{transform_indices = @transform_0, window_bounds = array<i64: 1, 34, 8, 1>}, {pipeline_mode = #tpu.pipeline_mode<synchronous>, transform_indices = @transform_1, window_bounds = array<i64: 3, 128>}, {pipeline_mode = #tpu.pipeline_mode<synchronous>, transform_indices = @transform_2, window_bounds = array<i64: 1, 128>}, {pipeline_mode = #tpu.pipeline_mode<synchronous>, transform_indices = @transform_3, window_bounds = array<i64: 384, 64>}, {pipeline_mode = #tpu.pipeline_mode<synchronous>, transform_indices = @transform_4, window_bounds = array<i64: 1, 64>}, {pipeline_mode = #tpu.pipeline_mode<synchronous>, transform_indices = @transform_5, window_bounds = array<i64: 512, 64>}, {pipeline_mode = #tpu.pipeline_mode<synchronous>, transform_indices = @transform_6, window_bounds = array<i64: 1, 64>}, {pipeline_mode = #tpu.pipeline_mode<synchronous>, transform_indices = @transform_7, window_bounds = array<i64: 64, 2>}, {pipeline_mode = #tpu.pipeline_mode<synchronous>, transform_indices = @transform_8, window_bounds = array<i64: 1, 2>}, {transform_indices = @transform_9, window_bounds = array<i64: 8, 2>}]} {
    %c0 = arith.constant 0 : index
    %c0_0 = arith.constant 0 : index
    %c0_1 = arith.constant 0 : index
    %c0_2 = arith.constant 0 : index
    %0 = vector.load %arg1[%c0, %c0_0, %c0_1, %c0_2] : memref<1x34x8x1xf32, #tpu.memory_space<vmem>>, vector<1x34x8x1xf32>
    %1 = vector.shape_cast %0 : vector<1x34x8x1xf32> to vector<34x8x1xf32>
    %2 = vector.extract_strided_slice %1 {offsets = [0, 0, 0], sizes = [32, 8, 1], strides = [1, 1, 1]} : vector<34x8x1xf32> to vector<32x8x1xf32>
    %c0_3 = arith.constant 0 : index
    %c0_4 = arith.constant 0 : index
    %3 = vector.load %arg2[%c0_3, %c0_4] : memref<3x128xf32, #tpu.memory_space<vmem>>, vector<1x128xf32>
    %4 = vector.shape_cast %3 : vector<1x128xf32> to vector<1x1x128xf32>
    %5 = vector.broadcast %2 : vector<32x8x1xf32> to vector<32x8x128xf32>
    %6 = vector.broadcast %4 : vector<1x1x128xf32> to vector<32x8x128xf32>
    %7 = arith.mulf %5, %6 : vector<32x8x128xf32>
    %c0_5 = arith.constant 0 : index
    %c0_6 = arith.constant 0 : index
    %8 = vector.load %arg3[%c0_5, %c0_6] : memref<1x128xf32, #tpu.memory_space<vmem>>, vector<1x128xf32>
    %9 = vector.shape_cast %8 : vector<1x128xf32> to vector<1x1x128xf32>
    %10 = vector.broadcast %9 : vector<1x1x128xf32> to vector<32x8x128xf32>
    %11 = arith.addf %7, %10 : vector<32x8x128xf32>
    %12 = vector.extract_strided_slice %1 {offsets = [1, 0, 0], sizes = [32, 8, 1], strides = [1, 1, 1]} : vector<34x8x1xf32> to vector<32x8x1xf32>
    %c1 = arith.constant 1 : index
    %c0_7 = arith.constant 0 : index
    %13 = vector.load %arg2[%c1, %c0_7] : memref<3x128xf32, #tpu.memory_space<vmem>>, vector<1x128xf32>
    %14 = vector.shape_cast %13 : vector<1x128xf32> to vector<1x1x128xf32>
    %15 = vector.broadcast %12 : vector<32x8x1xf32> to vector<32x8x128xf32>
    %16 = vector.broadcast %14 : vector<1x1x128xf32> to vector<32x8x128xf32>
    %17 = arith.mulf %15, %16 : vector<32x8x128xf32>
    %18 = arith.addf %11, %17 : vector<32x8x128xf32>
    %19 = vector.extract_strided_slice %1 {offsets = [2, 0, 0], sizes = [32, 8, 1], strides = [1, 1, 1]} : vector<34x8x1xf32> to vector<32x8x1xf32>
    %c2 = arith.constant 2 : index
    %c0_8 = arith.constant 0 : index
    %20 = vector.load %arg2[%c2, %c0_8] : memref<3x128xf32, #tpu.memory_space<vmem>>, vector<1x128xf32>
    %21 = vector.shape_cast %20 : vector<1x128xf32> to vector<1x1x128xf32>
    %22 = vector.broadcast %19 : vector<32x8x1xf32> to vector<32x8x128xf32>
    %23 = vector.broadcast %21 : vector<1x1x128xf32> to vector<32x8x128xf32>
    %24 = arith.mulf %22, %23 : vector<32x8x128xf32>
    %25 = arith.addf %18, %24 : vector<32x8x128xf32>
    %cst = arith.constant 0.000000e+00 : f32
    %26 = vector.broadcast %cst : f32 to vector<32x8x128xf32>
    %27 = arith.maximumf %25, %26 : vector<32x8x128xf32>
    %28 = vector.shape_cast %27 : vector<32x8x128xf32> to vector<16x2x8x128xf32>
    %cst_9 = arith.constant dense<0xFF800000> : vector<16x8x128xf32>
    %29 = vector.multi_reduction <maximumf>, %28, %cst_9 [1] : vector<16x2x8x128xf32> to vector<16x8x128xf32>
    %cst_10 = arith.constant 0.000000e+00 : f32
    %30 = vector.broadcast %cst_10 : f32 to vector<1x8x128xf32>
    %31 = tpu.concatenate %30, %29, %30 in 0 : vector<1x8x128xf32>, vector<16x8x128xf32>, vector<1x8x128xf32> -> vector<18x8x128xf32>
    %32 = vector.extract_strided_slice %31 {offsets = [0, 0, 0], sizes = [16, 8, 128], strides = [1, 1, 1]} : vector<18x8x128xf32> to vector<16x8x128xf32>
    %33 = vector.extract_strided_slice %31 {offsets = [1, 0, 0], sizes = [16, 8, 128], strides = [1, 1, 1]} : vector<18x8x128xf32> to vector<16x8x128xf32>
    %34 = vector.extract_strided_slice %31 {offsets = [2, 0, 0], sizes = [16, 8, 128], strides = [1, 1, 1]} : vector<18x8x128xf32> to vector<16x8x128xf32>
    %35 = tpu.concatenate %32, %33, %34 in 2 : vector<16x8x128xf32>, vector<16x8x128xf32>, vector<16x8x128xf32> -> vector<16x8x384xf32>
    %36 = vector.shape_cast %35 : vector<16x8x384xf32> to vector<128x384xf32>
    %c0_11 = arith.constant 0 : index
    %c0_12 = arith.constant 0 : index
    %37 = vector.load %arg4[%c0_11, %c0_12] : memref<384x64xf32, #tpu.memory_space<vmem>>, vector<384x64xf32>
    %cst_13 = arith.constant dense<0.000000e+00> : vector<128x64xf32>
    %38 = tpu.matmul %36, %37, %cst_13 {dimension_numbers = #tpu.dot_dimension_numbers<[1], [0], [0], [1], [0, 0, 1, 1], [], []>} : vector<128x384xf32>, vector<384x64xf32>, vector<128x64xf32> -> vector<128x64xf32>
    %c0_14 = arith.constant 0 : index
    %c0_15 = arith.constant 0 : index
    %39 = vector.load %arg5[%c0_14, %c0_15] : memref<1x64xf32, #tpu.memory_space<vmem>>, vector<1x64xf32>
    %40 = vector.broadcast %39 : vector<1x64xf32> to vector<128x64xf32>
    %41 = arith.addf %38, %40 : vector<128x64xf32>
    %cst_16 = arith.constant 0.000000e+00 : f32
    %42 = vector.broadcast %cst_16 : f32 to vector<128x64xf32>
    %43 = arith.maximumf %41, %42 : vector<128x64xf32>
    %44 = vector.shape_cast %43 : vector<128x64xf32> to vector<16x8x64xf32>
    %45 = vector.shape_cast %44 : vector<16x8x64xf32> to vector<8x2x8x64xf32>
    %cst_17 = arith.constant dense<0xFF800000> : vector<8x8x64xf32>
    %46 = vector.multi_reduction <maximumf>, %45, %cst_17 [1] : vector<8x2x8x64xf32> to vector<8x8x64xf32>
    %47 = tpu.transpose %46, [1, 0, 2] : vector<8x8x64xf32> -> vector<8x8x64xf32>
    %48 = vector.shape_cast %47 : vector<8x8x64xf32> to vector<8x512xf32>
    %c0_18 = arith.constant 0 : index
    %c0_19 = arith.constant 0 : index
    %49 = vector.load %arg6[%c0_18, %c0_19] : memref<512x64xf32, #tpu.memory_space<vmem>>, vector<512x64xf32>
    %cst_20 = arith.constant dense<0.000000e+00> : vector<8x64xf32>
    %50 = tpu.matmul %48, %49, %cst_20 {dimension_numbers = #tpu.dot_dimension_numbers<[1], [0], [0], [1], [0, 0, 1, 1], [], []>} : vector<8x512xf32>, vector<512x64xf32>, vector<8x64xf32> -> vector<8x64xf32>
    %c0_21 = arith.constant 0 : index
    %c0_22 = arith.constant 0 : index
    %51 = vector.load %arg7[%c0_21, %c0_22] : memref<1x64xf32, #tpu.memory_space<vmem>>, vector<1x64xf32>
    %52 = vector.broadcast %51 : vector<1x64xf32> to vector<8x64xf32>
    %53 = arith.addf %50, %52 : vector<8x64xf32>
    %cst_23 = arith.constant 0.000000e+00 : f32
    %54 = vector.broadcast %cst_23 : f32 to vector<8x64xf32>
    %55 = arith.maximumf %53, %54 : vector<8x64xf32>
    %c0_24 = arith.constant 0 : index
    %c0_25 = arith.constant 0 : index
    %56 = vector.load %arg8[%c0_24, %c0_25] : memref<64x2xf32, #tpu.memory_space<vmem>>, vector<64x2xf32>
    %cst_26 = arith.constant dense<0.000000e+00> : vector<8x2xf32>
    %57 = tpu.matmul %55, %56, %cst_26 {dimension_numbers = #tpu.dot_dimension_numbers<[1], [0], [0], [1], [0, 0, 1, 1], [], []>} : vector<8x64xf32>, vector<64x2xf32>, vector<8x2xf32> -> vector<8x2xf32>
    %c0_27 = arith.constant 0 : index
    %c0_28 = arith.constant 0 : index
    %58 = vector.load %arg9[%c0_27, %c0_28] : memref<1x2xf32, #tpu.memory_space<vmem>>, vector<1x2xf32>
    %59 = vector.broadcast %58 : vector<1x2xf32> to vector<8x2xf32>
    %60 = arith.addf %57, %59 : vector<8x2xf32>
    %c0_29 = arith.constant 0 : index
    %c0_30 = arith.constant 0 : index
    %61 = vector.load %arg10[%c0_29, %c0_30] : memref<8x2xf32, #tpu.memory_space<vmem>>, vector<8x2xf32>
    tpu.vector_store %arg10[%c0_29, %c0_30], %60 {strides = array<i32>} : memref<8x2xf32, #tpu.memory_space<vmem>>, vector<8x2xf32>,
    return
  }
  func.func @transform_0(%arg0: i32) -> (i32, i32, i32, i32) {
    %c0_i32 = arith.constant 0 : i32
    %c0_i32_0 = arith.constant 0 : i32
    %c0_i32_1 = arith.constant 0 : i32
    %c0_i32_2 = arith.constant 0 : i32
    return %arg0, %c0_i32, %c0_i32_0, %c0_i32_1 : i32, i32, i32, i32
  }
  func.func @transform_1(%arg0: i32) -> (i32, i32) {
    %c0_i32 = arith.constant 0 : i32
    %c0_i32_0 = arith.constant 0 : i32
    %c0_i32_1 = arith.constant 0 : i32
    return %c0_i32, %c0_i32_0 : i32, i32
  }
  func.func @transform_2(%arg0: i32) -> (i32, i32) {
    %c0_i32 = arith.constant 0 : i32
    %c0_i32_0 = arith.constant 0 : i32
    %c0_i32_1 = arith.constant 0 : i32
    return %c0_i32, %c0_i32_0 : i32, i32
  }
  func.func @transform_3(%arg0: i32) -> (i32, i32) {
    %c0_i32 = arith.constant 0 : i32
    %c0_i32_0 = arith.constant 0 : i32
    %c0_i32_1 = arith.constant 0 : i32
    return %c0_i32, %c0_i32_0 : i32, i32
  }
  func.func @transform_4(%arg0: i32) -> (i32, i32) {
    %c0_i32 = arith.constant 0 : i32
    %c0_i32_0 = arith.constant 0 : i32
    %c0_i32_1 = arith.constant 0 : i32
    return %c0_i32, %c0_i32_0 : i32, i32
  }
  func.func @transform_5(%arg0: i32) -> (i32, i32) {
    %c0_i32 = arith.constant 0 : i32
    %c0_i32_0 = arith.constant 0 : i32
    %c0_i32_1 = arith.constant 0 : i32
    return %c0_i32, %c0_i32_0 : i32, i32
  }
  func.func @transform_6(%arg0: i32) -> (i32, i32) {
    %c0_i32 = arith.constant 0 : i32
    %c0_i32_0 = arith.constant 0 : i32
    %c0_i32_1 = arith.constant 0 : i32
    return %c0_i32, %c0_i32_0 : i32, i32
  }
  func.func @transform_7(%arg0: i32) -> (i32, i32) {
    %c0_i32 = arith.constant 0 : i32
    %c0_i32_0 = arith.constant 0 : i32
    %c0_i32_1 = arith.constant 0 : i32
    return %c0_i32, %c0_i32_0 : i32, i32
  }
  func.func @transform_8(%arg0: i32) -> (i32, i32) {
    %c0_i32 = arith.constant 0 : i32
    %c0_i32_0 = arith.constant 0 : i32
    %c0_i32_1 = arith.constant 0 : i32
    return %c0_i32, %c0_i32_0 : i32, i32
  }
  func.func @transform_9(%arg0: i32) -> (i32, i32) {
    %c0_i32 = arith.constant 0 : i32
    %c0_i32_0 = arith.constant 0 : i32
    return %arg0, %c0_i32 : i32, i32
  }
}

</mosaic_0001>

<bundles_post_ra>
// kernel: tpu_custom_call.1
= control target key start
LH: loop header
LB: loop body
LE: loop exit
PB: predicated region body
PF: predicated region fallthrough
CT: control target
= control target key end

     0   :  { %v1923_v0 = vmov 0   ;;  %vm859_vm0 = vcmask 523264   ;;  %s1927_s30 = smov 64   ;;  %vm1929_vm1 = vmmov 0   ;;  %vm1476_vm2 = vcmask 15360   ;;  %s2716_s0 = inlined_call_operand.vmem [shape: f32[1,34,8,1], index: 0, kind: input, shape index: {}]   ;;  %s2717_s3 = inlined_call_operand.vmem [shape: f32[384,64], index: 3, kind: input, shape index: {}]   ;;  %s2718_s1 = inlined_call_operand.vmem [shape: f32[3,128], index: 1, kind: input, shape index: {}]   ;;  %s2719_s2 = inlined_call_operand.vmem [shape: f32[1,128], index: 2, kind: input, shape index: {}]   ;;  %s2720_s5 = inlined_call_operand.vmem [shape: f32[512,64], index: 5, kind: input, shape index: {}]   ;;  %s2721_s4 = inlined_call_operand.vmem [shape: f32[1,64], index: 4, kind: input, shape index: {}]   ;;  %s2722_s7 = inlined_call_operand.vmem [shape: f32[64,2], index: 7, kind: input, shape index: {}]   ;;  %s2723_s6 = inlined_call_operand.vmem [shape: f32[1,64], index: 6, kind: input, shape index: {}]   ;;  %s2724_s8 = inlined_call_operand.vmem [shape: f32[1,2], index: 8, kind: input, shape index: {}]   ;;  %s2725_s9 = inlined_call_operand.vmem [shape: f32[8,2], index: 9, kind: output, shape index: {}]  }
   0x1   :  { %1912 = vset.pattern.permute.xlu1 %v1923_v0  ;;  %1911 = vset.pattern.permute.xlu0 %v1923_v0  ;;  %v34_v1 = vld [vmem:[%s2716_s0 + $0x10] sm:$0xff]  ;;  %v32_v2 = vld [vmem:[%s2716_s0] sm:$0xff]  ;;  %v35_v3 = vld [vmem:[%s2716_s0 + $0x18] sm:$0xff] }
   0x2   :  { %79 = vperm.xlu1 %1912, %v34_v1   ;;  %69 = vperm.xlu0 %1911, %v32_v2   ;;  %v33_v4 = vld [vmem:[%s2716_s0 + $0x8] sm:$0xff]  ;;  %v36_v6 = vld [vmem:[%s2716_s0 + $0x20] sm:$0xff]  ;;  %v39_v7 = vld [vmem:[%s2716_s0 + $0x38] sm:$0xff] }
   0x3   :  { %v37_v5 = vld [vmem:[%s2716_s0 + $0x28] sm:$0xff]  ;;  %v38_v8 = vld [vmem:[%s2716_s0 + $0x30] sm:$0xff]  ;;  %v514_v9 = vld [vmem:[%s2717_s3 + $0x80] sm:$0xff] }
   0x4   :  { %v515_v10 = vld [vmem:[%s2717_s3 + $0x88] sm:$0xff]  ;;  %v40_v12 = vld [vmem:[%s2716_s0 + $0x40] sm:$0xff]  ;;  %v516_v16 = vld [vmem:[%s2717_s3 + $0x90] sm:$0xff] }
   0x5   :  { %v41_v11 = vld [vmem:[%s2716_s0 + $0x48] sm:$0xff]  ;;  %v1764_v13 = vpack.c.bf16 %v515_v10, %v514_v9  ;;  %v498_v14 = vld [vmem:[%s2717_s3] sm:$0xff]  ;;  %v517_v18 = vld [vmem:[%s2717_s3 + $0x98] sm:$0xff] }
   0x6   :  { %84 = vperm.xlu1 %1912, %v35_v3   ;;  %74 = vperm.xlu0 %1911, %v33_v4   ;;  %v499_v15 = vld [vmem:[%s2717_s3 + $0x8] sm:$0xff]  ;;  %v500_v19 = vld [vmem:[%s2717_s3 + $0x10] sm:$0xff]  ;;  %v501_v20 = vld [vmem:[%s2717_s3 + $0x18] sm:$0xff]  ;;  %v1768_v21 = vpack.c.bf16 %v517_v18, %v516_v16 }
   0x7   :  { %v1766_v17 = vpack.c.bf16 %v499_v15, %v498_v14  ;;  %1765 = vmatprep.subr.bf16.mxu0 %v1764_v13  ;;  %v530_v22 = vld [vmem:[%s2717_s3 + $0x100] sm:$0xff]  ;;  %v531_v23 = vld [vmem:[%s2717_s3 + $0x108] sm:$0xff]  ;;  %v1770_v25 = vpack.c.bf16 %v501_v20, %v500_v19  ;;  %v532_v31 = vld [vmem:[%s2717_s3 + $0x110] sm:$0xff] }
   0x8   :  { %v518_v24 = vld [vmem:[%s2717_s3 + $0xa0] sm:$0xff]  ;;  %v1796_v26 = vpack.c.bf16 %v531_v23, %v530_v22  ;;  %v519_v27 = vld [vmem:[%s2717_s3 + $0xa8] sm:$0xff]  ;;  %v533_v32 = vld [vmem:[%s2717_s3 + $0x118] sm:$0xff] }
   0x9   :  { %1767 = vmatpush3.bf16.msra.mxu0 %v1766_v17  ;;  %v502_v28 = vld [vmem:[%s2717_s3 + $0x20] sm:$0xff]  ;;  %v1772_v29 = vpack.c.bf16 %v519_v27, %v518_v24  ;;  %v503_v30 = vld [vmem:[%s2717_s3 + $0x28] sm:$0xff]  ;;  %v43_v33 = vld [vmem:[%s2716_s0 + $0x58] sm:$0xff]  ;;  %v1800_v34 = vpack.c.bf16 %v533_v32, %v532_v31 }
   0xa   :  { %94 = vperm.xlu1 %1912, %v37_v5   ;;  %89 = vperm.xlu0 %1911, %v36_v6   ;;  %v520_v35 = vld [vmem:[%s2717_s3 + $0xb0] sm:$0xff]  ;;  %v521_v36 = vld [vmem:[%s2717_s3 + $0xb8] sm:$0xff]  ;;  %v534_v38 = vld [vmem:[%s2717_s3 + $0x120] sm:$0xff]  ;;  %v1774_v40 = vpack.c.bf16 %v503_v30, %v502_v28 }
   0xb   :  { %1769 = vmatprep.subr.bf16.mxu0 %v1768_v21  ;;  %v42_v37 = vld [vmem:[%s2716_s0 + $0x50] sm:$0xff]  ;;  %1797 = vmatprep.subr.bf16.mxu1 %v1796_v26  ;;  %v535_v39 = vld [vmem:[%s2717_s3 + $0x128] sm:$0xff]  ;;  %v1776_v41 = vpack.c.bf16 %v521_v36, %v520_v35  ;;  %v505_v43 = vld [vmem:[%s2717_s3 + $0x38] sm:$0xff] }
   0xc   :  { %1799 = vmatpush3.bf16.msra.mxu1 %v1796_v26  ;;  %v504_v42 = vld [vmem:[%s2717_s3 + $0x30] sm:$0xff]  ;;  %v1804_v44 = vpack.c.bf16 %v535_v39, %v534_v38  ;;  %v522_v45 = vld [vmem:[%s2717_s3 + $0xc0] sm:$0xff]  ;;  %v523_v46 = vld [vmem:[%s2717_s3 + $0xc8] sm:$0xff] }
   0xd   :  { %1771 = vmatpush3.bf16.msra.mxu0 %v1770_v25  ;;  %1801 = vmatprep.subr.bf16.mxu1 %v1800_v34  ;;  %v536_v47 = vld [vmem:[%s2717_s3 + $0x130] sm:$0xff]  ;;  %v537_v48 = vld [vmem:[%s2717_s3 + $0x138] sm:$0xff]  ;;  %v45_v49 = vld [vmem:[%s2716_s0 + $0x68] sm:$0xff]  ;;  %v1778_v51 = vpack.c.bf16 %v505_v43, %v504_v42  ;;  %v1780_v52 = vpack.c.bf16 %v523_v46, %v522_v45 }
   0xe   :  { %104 = vperm.xlu1 %1912, %v39_v7   ;;  %99 = vperm.xlu0 %1911, %v38_v8   ;;  %v44_v50 = vld [vmem:[%s2716_s0 + $0x60] sm:$0xff]  ;;  %v507_v54 = vld [vmem:[%s2717_s3 + $0x48] sm:$0xff]  ;;  %v1808_v55 = vpack.c.bf16 %v537_v48, %v536_v47  ;;  %v524_v56 = vld [vmem:[%s2717_s3 + $0xd0] sm:$0xff] }
   0xf   :  { %1773 = vmatprep.subr.bf16.mxu0 %v1772_v29  ;;  %v506_v53 = vld [vmem:[%s2717_s3 + $0x40] sm:$0xff]  ;;  %v525_v57 = vld [vmem:[%s2717_s3 + $0xd8] sm:$0xff]  ;;  %v539_v59 = vld [vmem:[%s2717_s3 + $0x148] sm:$0xff] }
  0x10   :  { %1803 = vmatpush3.bf16.msra.mxu1 %v1800_v34  ;;  %v538_v58 = vld [vmem:[%s2717_s3 + $0x140] sm:$0xff]  ;;  %v47_v60 = vld [vmem:[%s2716_s0 + $0x78] sm:$0xff]  ;;  %v46_v61 = vld [vmem:[%s2716_s0 + $0x70] sm:$0xff]  ;;  %v1782_v62 = vpack.c.bf16 %v507_v54, %v506_v53  ;;  %v1784_v63 = vpack.c.bf16 %v525_v57, %v524_v56 }
  0x11   :  { %1775 = vmatpush3.bf16.msra.mxu0 %v1774_v40  ;;  %1805 = vmatprep.subr.bf16.mxu1 %v1804_v44  ;;  %v508_v0 = vld [vmem:[%s2717_s3 + $0x50] sm:$0xff]  ;;  %v509_v1 = vld [vmem:[%s2717_s3 + $0x58] sm:$0xff]  ;;  %v1812_v2 = vpack.c.bf16 %v539_v59, %v538_v58  ;;  %v526_v3 = vld [vmem:[%s2717_s3 + $0xe0] sm:$0xff] }
  0x12   :  { %114 = vperm.xlu1 %1912, %v41_v11   ;;  %109 = vperm.xlu0 %1911, %v40_v12   ;;  %v527_v4 = vld [vmem:[%s2717_s3 + $0xe8] sm:$0xff]  ;;  %v540_v5 = vld [vmem:[%s2717_s3 + $0x150] sm:$0xff]  ;;  %v541_v6 = vld [vmem:[%s2717_s3 + $0x158] sm:$0xff]  ;;  %v1786_v9 = vpack.c.bf16 %v509_v1, %v508_v0 }
  0x13   :  { %1777 = vmatprep.subr.bf16.mxu0 %v1776_v41  ;;  %v49_v7 = vld [vmem:[%s2716_s0 + $0x88] sm:$0xff]  ;;  %v48_v8 = vld [vmem:[%s2716_s0 + $0x80] sm:$0xff]  ;;  %v1788_v10 = vpack.c.bf16 %v527_v4, %v526_v3  ;;  %v1816_v13 = vpack.c.bf16 %v541_v6, %v540_v5  ;;  %v528_v14 = vld [vmem:[%s2717_s3 + $0xf0] sm:$0xff] }
  0x14   :  { %1807 = vmatpush3.bf16.msra.mxu1 %v1804_v44  ;;  %v510_v11 = vld [vmem:[%s2717_s3 + $0x60] sm:$0xff]  ;;  %v511_v12 = vld [vmem:[%s2717_s3 + $0x68] sm:$0xff]  ;;  %v529_v15 = vld [vmem:[%s2717_s3 + $0xf8] sm:$0xff] }
  0x15   :  { %1779 = vmatpush3.bf16.msra.mxu0 %v1778_v51  ;;  %1809 = vmatprep.subr.bf16.mxu1 %v1808_v55  ;;  %v542_v16 = vld [vmem:[%s2717_s3 + $0x160] sm:$0xff]  ;;  %v543_v17 = vld [vmem:[%s2717_s3 + $0x168] sm:$0xff]  ;;  %v51_v18 = vld [vmem:[%s2716_s0 + $0x98] sm:$0xff]  ;;  %v1790_v20 = vpack.c.bf16 %v511_v12, %v510_v11  ;;  %v1792_v21 = vpack.c.bf16 %v529_v15, %v528_v14 }
  0x16   :  { %124 = vperm.xlu1 %1912, %v43_v33   ;;  %119 = vperm.xlu0 %1911, %v42_v37   ;;  %v50_v19 = vld [vmem:[%s2716_s0 + $0x90] sm:$0xff]  ;;  %v513_v23 = vld [vmem:[%s2717_s3 + $0x78] sm:$0xff]  ;;  %v1820_v24 = vpack.c.bf16 %v543_v17, %v542_v16  ;;  %v53_v27 = vld [vmem:[%s2716_s0 + $0xa8] sm:$0xff] }
  0x17   :  { %1781 = vmatprep.subr.bf16.mxu0 %v1780_v52  ;;  %v512_v22 = vld [vmem:[%s2717_s3 + $0x70] sm:$0xff]  ;;  %v545_v26 = vld [vmem:[%s2717_s3 + $0x178] sm:$0xff]  ;;  %v52_v28 = vld [vmem:[%s2716_s0 + $0xa0] sm:$0xff] }
  0x18   :  { %1811 = vmatpush3.bf16.msra.mxu1 %v1808_v55  ;;  %v544_v25 = vld [vmem:[%s2717_s3 + $0x170] sm:$0xff]  ;;  %v1794_v29 = vpack.c.bf16 %v513_v23, %v512_v22  ;;  %v55_v31 = vld [vmem:[%s2716_s0 + $0xb8] sm:$0xff]  ;;  %v57_v33 = vld [vmem:[%s2716_s0 + $0xc8] sm:$0xff] }
  0x19   :  { %1783 = vmatpush3.bf16.msra.mxu0 %v1782_v62  ;;  %1813 = vmatprep.subr.bf16.mxu1 %v1812_v2  ;;  %v1824_v30 = vpack.c.bf16 %v545_v26, %v544_v25  ;;  %v54_v32 = vld [vmem:[%s2716_s0 + $0xb0] sm:$0xff]  ;;  %v56_v34 = vld [vmem:[%s2716_s0 + $0xc0] sm:$0xff]  ;;  %v59_v35 = vld [vmem:[%s2716_s0 + $0xd8] sm:$0xff] }
  0x1a   :  { %134 = vperm.xlu1 %1912, %v45_v49   ;;  %129 = vperm.xlu0 %1911, %v44_v50   ;;  %v58_v36 = vld [vmem:[%s2716_s0 + $0xd0] sm:$0xff]  ;;  %v61_v37 = vld [vmem:[%s2716_s0 + $0xe8] sm:$0xff]  ;;  %v60_v38 = vld [vmem:[%s2716_s0 + $0xe0] sm:$0xff] }
  0x1b   :  { %1785 = vmatprep.subr.bf16.mxu0 %v1784_v63  ;;  %v63_v39 = vld [vmem:[%s2716_s0 + $0xf8] sm:$0xff]  ;;  %v62_v40 = vld [vmem:[%s2716_s0 + $0xf0] sm:$0xff]  ;;  %v65_v41 = vld [vmem:[%s2716_s0 + $0x108] sm:$0xff] }
  0x1c   :  { %1815 = vmatpush3.bf16.msra.mxu1 %v1812_v2  ;;  %v64_v42 = vld [vmem:[%s2716_s0 + $0x100] sm:$0xff] }
  0x1d   :  { %1787 = vmatpush3.bf16.msra.mxu0 %v1786_v9  ;;  %1817 = vmatprep.subr.bf16.mxu1 %v1816_v13  ;;  %v2229_v43 = vld [vmem:[%s2718_s1] ss:$0 sm:$0xff]  ;;  %v2240_v48 = vld [vmem:[%s2718_s1 + $0x1] ss:$0 sm:$0xff]  ;;  %v2246_v52 = vld [vmem:[%s2718_s1 + $0x2] ss:$0 sm:$0xff] }
  0x1e   :  { %144 = vperm.xlu1 %1912, %v47_v60   ;;  %139 = vperm.xlu0 %1911, %v46_v61   ;;  %v2235_v47 = vld [vmem:[%s2719_s2] ss:$0 sm:$0xff] }
  0x1f   :  { %1789 = vmatprep.subr.bf16.mxu0 %v1788_v10 }
  0x20   :  { %1819 = vmatpush3.bf16.msra.mxu1 %v1816_v13 }
  0x21   :  { %1791 = vmatpush3.bf16.msra.mxu0 %v1790_v20  ;;  %1821 = vmatprep.subr.bf16.mxu1 %v1820_v24 }
  0x22   :  { %154 = vperm.xlu1 %1912, %v49_v7   ;;  %149 = vperm.xlu0 %1911, %v48_v8  }
  0x23   :  { %1793 = vmatprep.subr.bf16.mxu0 %v1792_v21 }
  0x24   :  { %1823 = vmatpush3.bf16.msra.mxu1 %v1820_v24 }
  0x25   :  { %1795 = vmatpush3.bf16.msra.mxu0 %v1794_v29  ;;  %1825 = vmatprep.subr.bf16.mxu1 %v1824_v30 }
  0x26   :  { %164 = vperm.xlu1 %1912, %v51_v18   ;;  %159 = vperm.xlu0 %1911, %v50_v19  }
  0x28   :  { %1827 = vmatpush3.bf16.msra.mxu1 %v1824_v30 }
  0x2a   :  { %174 = vperm.xlu1 %1912, %v53_v27   ;;  %169 = vperm.xlu0 %1911, %v52_v28  }
  0x2e   :  { %184 = vperm.xlu1 %1912, %v55_v31   ;;  %179 = vperm.xlu0 %1911, %v54_v32  }
  0x32   :  { %194 = vperm.xlu1 %1912, %v57_v33   ;;  %189 = vperm.xlu0 %1911, %v56_v34  }
  0x36   :  { %204 = vperm.xlu1 %1912, %v59_v35   ;;  %199 = vperm.xlu0 %1911, %v58_v36  }
  0x3a   :  { %214 = vperm.xlu1 %1912, %v61_v37   ;;  %209 = vperm.xlu0 %1911, %v60_v38  }
  0x3e   :  { %224 = vperm.xlu1 %1912, %v63_v39   ;;  %219 = vperm.xlu0 %1911, %v62_v40  }
  0x42   :  { %379 = vperm.xlu1 %1912, %v65_v41   ;;  %305 = vperm.xlu0 %1911, %v64_v42  }
  0x81   :  { %v80_v44 = vpop.permute.xlu1 %79  ;;  %v70_v45 = vpop.permute.xlu0 %69 }
  0x82   :  { %v231_v46 = vmul.f32 %v2229_v43, %v70_v45  ;;  %v233_v49 = vmul.f32 %v2229_v43, %v80_v44  ;;  %v313_v58 = vmul.f32 %v2240_v48, %v80_v44  ;;  %v386_v61 = vmul.f32 %v2246_v52, %v80_v44 }
  0x84   :  { %v270_v55 = vadd.f32 %v2235_v47, %v231_v46  ;;  %v272_v57 = vadd.f32 %v2235_v47, %v233_v49  ;;  %v1924_v46 = vmov 0.0  }
  0x85   :  { %v85_v50 = vpop.permute.xlu1 %84  ;;  %v75_v51 = vpop.permute.xlu0 %74 }
  0x86   :  { %v234_v53 = vmul.f32 %v2229_v43, %v85_v50  ;;  %v232_v54 = vmul.f32 %v2229_v43, %v75_v51  ;;  %v312_v56 = vmul.f32 %v2240_v48, %v75_v51  ;;  %v314_v59 = vmul.f32 %v2240_v48, %v85_v50 }
  0x87   :  { %v387_v2 = vmul.f32 %v2246_v52, %v85_v50 }
  0x88   :  { %v271_v60 = vadd.f32 %v2235_v47, %v232_v54  ;;  %v344_v62 = vadd.f32 %v312_v56, %v270_v55  ;;  %v273_v1 = vadd.f32 %v2235_v47, %v234_v53  ;;  %v346_v9 = vadd.f32 %v314_v59, %v272_v57 }
  0x89   :  { %v95_v63 = vpop.permute.xlu1 %94  ;;  %v90_v0 = vpop.permute.xlu0 %89 }
  0x8a   :  { %v345_v3 = vadd.f32 %v313_v58, %v271_v60  ;;  %v236_v4 = vmul.f32 %v2229_v43, %v95_v63  ;;  %v235_v5 = vmul.f32 %v2229_v43, %v90_v0  ;;  %v315_v6 = vmul.f32 %v2240_v48, %v90_v0 }
  0x8b   :  { %v388_v7 = vmul.f32 %v2246_v52, %v90_v0  ;;  %v418_v8 = vadd.f32 %v386_v61, %v344_v62  ;;  %v316_v10 = vmul.f32 %v2240_v48, %v95_v63  ;;  %v389_v13 = vmul.f32 %v2246_v52, %v95_v63 }
  0x8c   :  { %v419_v11 = vadd.f32 %v387_v2, %v345_v3  ;;  %v275_v12 = vadd.f32 %v2235_v47, %v236_v4  ;;  %v274_v14 = vadd.f32 %v2235_v47, %v235_v5  ;;  %v347_v15 = vadd.f32 %v315_v6, %v273_v1 }
  0x8d   :  { %v105_v16 = vpop.permute.xlu1 %104  ;;  %v100_v17 = vpop.permute.xlu0 %99  ;;  %v420_v18 = vadd.f32 %v388_v7, %v346_v9  ;;  %v450_v21 = vmax.f32 %v418_v8, 0.0 }
  0x8e   :  { %v238_v19 = vmul.f32 %v2229_v43, %v105_v16  ;;  %v237_v20 = vmul.f32 %v2229_v43, %v100_v17  ;;  %v348_v22 = vadd.f32 %v316_v10, %v274_v14  ;;  %v317_v23 = vmul.f32 %v2240_v48, %v100_v17 }
  0x8f   :  { %v390_v24 = vmul.f32 %v2246_v52, %v100_v17  ;;  %v451_v25 = vmax.f32 %v419_v11, 0.0  ;;  %v318_v26 = vmul.f32 %v2240_v48, %v105_v16  ;;  %v421_v28 = vadd.f32 %v389_v13, %v347_v15 }
  0x90   :  { %v276_v27 = vadd.f32 %v2235_v47, %v237_v20  ;;  %v277_v29 = vadd.f32 %v2235_v47, %v238_v19  ;;  %v391_v30 = vmul.f32 %v2246_v52, %v105_v16  ;;  %v349_v31 = vadd.f32 %v317_v23, %v275_v12 }
  0x91   :  { %v115_v32 = vpop.permute.xlu1 %114  ;;  %v110_v33 = vpop.permute.xlu0 %109  ;;  %v482_v34 = vmax.f32 %v450_v21, %v451_v25  ;;  %v422_v35 = vadd.f32 %v390_v24, %v348_v22  ;;  %v452_v38 = vmax.f32 %v420_v18, 0.0  ;;  %v453_v42 = vmax.f32 %v421_v28, 0.0 }
  0x92   :  { %v240_v36 = vmul.f32 %v2229_v43, %v115_v32  ;;  %v350_v37 = vadd.f32 %v318_v26, %v276_v27  ;;  %v239_v39 = vmul.f32 %v2229_v43, %v110_v33  ;;  %v319_v40 = vmul.f32 %v2240_v48, %v110_v33 }
  0x93   :  { %v392_v41 = vmul.f32 %v2246_v52, %v110_v33  ;;  %617 = vmatprep.mubr.f32.mxu0 %v482_v34  ;;  %v320_v44 = vmul.f32 %v2240_v48, %v115_v32  ;;  %v393_v45 = vmul.f32 %v2246_v52, %v115_v32  ;;  %v423_v49 = vadd.f32 %v391_v30, %v349_v31 }
  0x94   :  { %618 = vmatmul.mubr.f32.vlgmr.msra.gmra.mrb[0].mxu0 %v1924_v46  ;;  %v279_v50 = vadd.f32 %v2235_v47, %v240_v36  ;;  %v278_v51 = vadd.f32 %v2235_v47, %v239_v39  ;;  %v351_v53 = vadd.f32 %v319_v40, %v277_v29  ;;  %v483_v54 = vmax.f32 %v452_v38, %v453_v42 }
  0x95   :  { %v125_v55 = vpop.permute.xlu1 %124  ;;  %v120_v56 = vpop.permute.xlu0 %119  ;;  %v424_v57 = vadd.f32 %v392_v41, %v350_v37  ;;  %v454_v60 = vmax.f32 %v422_v35, 0.0  ;;  %v455_v0 = vmax.f32 %v423_v49, 0.0 }
  0x96   :  { %v242_v58 = vmul.f32 %v2229_v43, %v125_v55  ;;  %v241_v59 = vmul.f32 %v2229_v43, %v120_v56  ;;  %622 = vmatprep.mubr.f32.mxu0 %v483_v54  ;;  %1721 = vmatprep.mubr.f32.mxu1 %v483_v54  ;;  %v352_v61 = vadd.f32 %v320_v44, %v278_v51 }
  0x97   :  { %v321_v62 = vmul.f32 %v2240_v48, %v120_v56  ;;  %v394_v63 = vmul.f32 %v2246_v52, %v120_v56  ;;  %v322_v1 = vmul.f32 %v2240_v48, %v125_v55  ;;  %v425_v3 = vadd.f32 %v393_v45, %v351_v53 }
  0x98   :  { %v280_v2 = vadd.f32 %v2235_v47, %v241_v59  ;;  %623 = vmatmul.mubr.f32.gmra.mrb[2].mxu0 %v482_v34  ;;  %v281_v4 = vadd.f32 %v2235_v47, %v242_v58  ;;  %v395_v5 = vmul.f32 %v2246_v52, %v125_v55  ;;  %v484_v7 = vmax.f32 %v454_v60, %v455_v0 }
  0x99   :  { %v353_v6 = vadd.f32 %v321_v62, %v279_v50  ;;  %v135_v8 = vpop.permute.xlu1 %134  ;;  %v130_v9 = vpop.permute.xlu0 %129  ;;  %v426_v10 = vadd.f32 %v394_v63, %v352_v61  ;;  %v456_v13 = vmax.f32 %v424_v57, 0.0  ;;  %v457_v17 = vmax.f32 %v425_v3, 0.0 }
  0x9a   :  { %v244_v11 = vmul.f32 %v2229_v43, %v135_v8  ;;  %v354_v12 = vadd.f32 %v322_v1, %v280_v2  ;;  %627 = vmatprep.mubr.f32.mxu0 %v484_v7  ;;  %1722 = vmatmul.mubr.f32.vlgmr.msra.gmra.mrb[0].mxu1 %v484_v7  ;;  %v243_v14 = vmul.f32 %v2229_v43, %v130_v9 }
  0x9b   :  { %v323_v15 = vmul.f32 %v2240_v48, %v130_v9  ;;  %v396_v16 = vmul.f32 %v2246_v52, %v130_v9  ;;  %v324_v18 = vmul.f32 %v2240_v48, %v135_v8  ;;  %v397_v19 = vmul.f32 %v2246_v52, %v135_v8 }
  0x9c   :  { %628 = vmatmul.mubr.f32.gmra.mrb[4].mxu0 %v483_v54  ;;  %v427_v20 = vadd.f32 %v395_v5, %v353_v6  ;;  %v283_v21 = vadd.f32 %v2235_v47, %v244_v11  ;;  %v282_v22 = vadd.f32 %v2235_v47, %v243_v14  ;;  %v485_v24 = vmax.f32 %v456_v13, %v457_v17 }
  0x9d   :  { %v355_v23 = vadd.f32 %v323_v15, %v281_v4  ;;  %v145_v25 = vpop.permute.xlu1 %144  ;;  %v140_v26 = vpop.permute.xlu0 %139  ;;  %v428_v27 = vadd.f32 %v396_v16, %v354_v12  ;;  %v458_v30 = vmax.f32 %v426_v10, 0.0 }
  0x9e   :  { %v246_v28 = vmul.f32 %v2229_v43, %v145_v25  ;;  %v245_v29 = vmul.f32 %v2229_v43, %v140_v26  ;;  %632 = vmatprep.mubr.f32.mxu0 %v485_v24  ;;  %1724 = vmatprep.mubr.f32.mxu1 %v485_v24  ;;  %v356_v31 = vadd.f32 %v324_v18, %v282_v22  ;;  %v459_v34 = vmax.f32 %v427_v20, 0.0 }
  0x9f   :  { %v325_v32 = vmul.f32 %v2240_v48, %v140_v26  ;;  %v398_v33 = vmul.f32 %v2246_v52, %v140_v26  ;;  %v326_v35 = vmul.f32 %v2240_v48, %v145_v25  ;;  %v429_v37 = vadd.f32 %v397_v19, %v355_v23 }
  0xa0   :  { %v284_v36 = vadd.f32 %v2235_v47, %v245_v29  ;;  %633 = vmatmul.mubr.f32.gmra.mrb[6].mxu0 %v484_v7  ;;  %v285_v38 = vadd.f32 %v2235_v47, %v246_v28  ;;  %v399_v39 = vmul.f32 %v2246_v52, %v145_v25  ;;  %v486_v41 = vmax.f32 %v458_v30, %v459_v34 }
  0xa1   :  { %v357_v40 = vadd.f32 %v325_v32, %v283_v21  ;;  %v155_v42 = vpop.permute.xlu1 %154  ;;  %v150_v44 = vpop.permute.xlu0 %149  ;;  %v430_v45 = vadd.f32 %v398_v33, %v356_v31  ;;  %v460_v51 = vmax.f32 %v428_v27, 0.0  ;;  %v461_v56 = vmax.f32 %v429_v37, 0.0 }
  0xa2   :  { %v248_v49 = vmul.f32 %v2229_v43, %v155_v42  ;;  %v358_v50 = vadd.f32 %v326_v35, %v284_v36  ;;  %637 = vmatprep.mubr.f32.mxu0 %v486_v41  ;;  %1725 = vmatmul.mubr.f32.gmra.mrb[2].mxu1 %v486_v41  ;;  %v247_v53 = vmul.f32 %v2229_v43, %v150_v44 }
  0xa3   :  { %v327_v54 = vmul.f32 %v2240_v48, %v150_v44  ;;  %v400_v55 = vmul.f32 %v2246_v52, %v150_v44  ;;  %v328_v57 = vmul.f32 %v2240_v48, %v155_v42  ;;  %v401_v58 = vmul.f32 %v2246_v52, %v155_v42 }
  0xa4   :  { %638 = vmatmul.mubr.f32.gmra.mrb[8].mxu0 %v485_v24  ;;  %v431_v59 = vadd.f32 %v399_v39, %v357_v40  ;;  %v287_v60 = vadd.f32 %v2235_v47, %v248_v49  ;;  %v286_v61 = vadd.f32 %v2235_v47, %v247_v53  ;;  %v487_v63 = vmax.f32 %v460_v51, %v461_v56 }
  0xa5   :  { %v359_v62 = vadd.f32 %v327_v54, %v285_v38  ;;  %v165_v0 = vpop.permute.xlu1 %164  ;;  %v160_v1 = vpop.permute.xlu0 %159  ;;  %v432_v2 = vadd.f32 %v400_v55, %v358_v50  ;;  %v462_v5 = vmax.f32 %v430_v45, 0.0 }
  0xa6   :  { %v250_v3 = vmul.f32 %v2229_v43, %v165_v0  ;;  %v249_v4 = vmul.f32 %v2229_v43, %v160_v1  ;;  %642 = vmatprep.mubr.f32.mxu0 %v487_v63  ;;  %1727 = vmatprep.mubr.f32.mxu1 %v487_v63  ;;  %v360_v6 = vadd.f32 %v328_v57, %v286_v61  ;;  %v463_v9 = vmax.f32 %v431_v59, 0.0 }
  0xa7   :  { %v329_v7 = vmul.f32 %v2240_v48, %v160_v1  ;;  %v402_v8 = vmul.f32 %v2246_v52, %v160_v1  ;;  %v330_v10 = vmul.f32 %v2240_v48, %v165_v0  ;;  %v433_v12 = vadd.f32 %v401_v58, %v359_v62 }
  0xa8   :  { %v288_v11 = vadd.f32 %v2235_v47, %v249_v4  ;;  %643 = vmatmul.mubr.f32.gmra.mrb[10].mxu0 %v486_v41  ;;  %v289_v13 = vadd.f32 %v2235_v47, %v250_v3  ;;  %v403_v14 = vmul.f32 %v2246_v52, %v165_v0  ;;  %v488_v16 = vmax.f32 %v462_v5, %v463_v9 }
  0xa9   :  { %v361_v15 = vadd.f32 %v329_v7, %v287_v60  ;;  %v175_v17 = vpop.permute.xlu1 %174  ;;  %v170_v18 = vpop.permute.xlu0 %169  ;;  %v434_v19 = vadd.f32 %v402_v8, %v360_v6  ;;  %v464_v22 = vmax.f32 %v432_v2, 0.0  ;;  %v465_v26 = vmax.f32 %v433_v12, 0.0 }
  0xaa   :  { %v252_v20 = vmul.f32 %v2229_v43, %v175_v17  ;;  %v362_v21 = vadd.f32 %v330_v10, %v288_v11  ;;  %647 = vmatprep.mubr.f32.mxu0 %v488_v16  ;;  %1728 = vmatmul.mubr.f32.gmra.mrb[4].mxu1 %v488_v16  ;;  %v251_v23 = vmul.f32 %v2229_v43, %v170_v18 }
  0xab   :  { %v331_v24 = vmul.f32 %v2240_v48, %v170_v18  ;;  %v404_v25 = vmul.f32 %v2246_v52, %v170_v18  ;;  %v332_v27 = vmul.f32 %v2240_v48, %v175_v17  ;;  %v405_v28 = vmul.f32 %v2246_v52, %v175_v17 }
  0xac   :  { %648 = vmatmul.mubr.f32.gmra.mrb[12].mxu0 %v487_v63  ;;  %v435_v29 = vadd.f32 %v403_v14, %v361_v15  ;;  %v291_v30 = vadd.f32 %v2235_v47, %v252_v20  ;;  %v290_v31 = vadd.f32 %v2235_v47, %v251_v23  ;;  %v489_v33 = vmax.f32 %v464_v22, %v465_v26 }
  0xad   :  { %v363_v32 = vadd.f32 %v331_v24, %v289_v13  ;;  %v185_v34 = vpop.permute.xlu1 %184  ;;  %v180_v35 = vpop.permute.xlu0 %179  ;;  %v436_v36 = vadd.f32 %v404_v25, %v362_v21  ;;  %v466_v39 = vmax.f32 %v434_v19, 0.0 }
  0xae   :  { %v254_v37 = vmul.f32 %v2229_v43, %v185_v34  ;;  %v253_v38 = vmul.f32 %v2229_v43, %v180_v35  ;;  %652 = vmatprep.mubr.f32.mxu0 %v489_v33  ;;  %1730 = vmatprep.mubr.f32.mxu1 %v489_v33  ;;  %v364_v40 = vadd.f32 %v332_v27, %v290_v31  ;;  %v467_v44 = vmax.f32 %v435_v29, 0.0 }
  0xaf   :  { %v333_v41 = vmul.f32 %v2240_v48, %v180_v35  ;;  %v406_v42 = vmul.f32 %v2246_v52, %v180_v35  ;;  %v334_v45 = vmul.f32 %v2240_v48, %v185_v34  ;;  %v437_v50 = vadd.f32 %v405_v28, %v363_v32 }
  0xb0   :  { %v292_v49 = vadd.f32 %v2235_v47, %v253_v38  ;;  %653 = vmatmul.mubr.f32.gmra.mrb[14].mxu0 %v488_v16  ;;  %v293_v51 = vadd.f32 %v2235_v47, %v254_v37  ;;  %v407_v53 = vmul.f32 %v2246_v52, %v185_v34  ;;  %v490_v55 = vmax.f32 %v466_v39, %v467_v44 }
  0xb1   :  { %v365_v54 = vadd.f32 %v333_v41, %v291_v30  ;;  %v195_v56 = vpop.permute.xlu1 %194  ;;  %v190_v57 = vpop.permute.xlu0 %189  ;;  %v438_v58 = vadd.f32 %v406_v42, %v364_v40  ;;  %v468_v61 = vmax.f32 %v436_v36, 0.0  ;;  %v469_v1 = vmax.f32 %v437_v50, 0.0 }
  0xb2   :  { %v256_v59 = vmul.f32 %v2229_v43, %v195_v56  ;;  %v366_v60 = vadd.f32 %v334_v45, %v292_v49  ;;  %657 = vmatprep.mubr.f32.mxu0 %v490_v55  ;;  %1731 = vmatmul.mubr.f32.gmra.mrb[6].mxu1 %v490_v55  ;;  %v255_v62 = vmul.f32 %v2229_v43, %v190_v57 }
  0xb3   :  { %v335_v63 = vmul.f32 %v2240_v48, %v190_v57  ;;  %v408_v0 = vmul.f32 %v2246_v52, %v190_v57  ;;  %v336_v2 = vmul.f32 %v2240_v48, %v195_v56  ;;  %v409_v3 = vmul.f32 %v2246_v52, %v195_v56 }
  0xb4   :  { %658 = vmatmul.mubr.f32.gmra.mrb[16].mxu0 %v489_v33  ;;  %v439_v4 = vadd.f32 %v407_v53, %v365_v54  ;;  %v295_v5 = vadd.f32 %v2235_v47, %v256_v59  ;;  %v294_v6 = vadd.f32 %v2235_v47, %v255_v62  ;;  %v491_v8 = vmax.f32 %v468_v61, %v469_v1 }
  0xb5   :  { %v367_v7 = vadd.f32 %v335_v63, %v293_v51  ;;  %v205_v9 = vpop.permute.xlu1 %204  ;;  %v200_v10 = vpop.permute.xlu0 %199  ;;  %v440_v11 = vadd.f32 %v408_v0, %v366_v60  ;;  %v470_v14 = vmax.f32 %v438_v58, 0.0 }
  0xb6   :  { %v258_v12 = vmul.f32 %v2229_v43, %v205_v9  ;;  %v257_v13 = vmul.f32 %v2229_v43, %v200_v10  ;;  %662 = vmatprep.mubr.f32.mxu0 %v491_v8  ;;  %1733 = vmatprep.mubr.f32.mxu1 %v491_v8  ;;  %v368_v15 = vadd.f32 %v336_v2, %v294_v6  ;;  %v471_v18 = vmax.f32 %v439_v4, 0.0 }
  0xb7   :  { %v337_v16 = vmul.f32 %v2240_v48, %v200_v10  ;;  %v410_v17 = vmul.f32 %v2246_v52, %v200_v10  ;;  %v338_v19 = vmul.f32 %v2240_v48, %v205_v9  ;;  %v441_v21 = vadd.f32 %v409_v3, %v367_v7 }
  0xb8   :  { %v296_v20 = vadd.f32 %v2235_v47, %v257_v13  ;;  %663 = vmatmul.mubr.f32.gmra.mrb[18].mxu0 %v490_v55  ;;  %v297_v22 = vadd.f32 %v2235_v47, %v258_v12  ;;  %v411_v23 = vmul.f32 %v2246_v52, %v205_v9  ;;  %v492_v25 = vmax.f32 %v470_v14, %v471_v18  ;;  %v1225_v18 = vld [vmem:[%s2720_s5 + $0x188] sm:$0xff] }
  0xb9   :  { %v369_v24 = vadd.f32 %v337_v16, %v295_v5  ;;  %v215_v26 = vpop.permute.xlu1 %214  ;;  %v210_v27 = vpop.permute.xlu0 %209  ;;  %v442_v28 = vadd.f32 %v410_v17, %v368_v15  ;;  %v472_v31 = vmax.f32 %v440_v11, 0.0  ;;  %v473_v35 = vmax.f32 %v441_v21, 0.0  ;;  %v1193_v21 = vld [vmem:[%s2720_s5 + $0x88] sm:$0xff] }
  0xba   :  { %v260_v29 = vmul.f32 %v2229_v43, %v215_v26  ;;  %v370_v30 = vadd.f32 %v338_v19, %v296_v20  ;;  %667 = vmatprep.mubr.f32.mxu0 %v492_v25  ;;  %1734 = vmatmul.mubr.f32.gmra.mrb[8].mxu1 %v492_v25  ;;  %v259_v32 = vmul.f32 %v2229_v43, %v210_v27  ;;  %v1192_v19 = vld [vmem:[%s2720_s5 + $0x80] sm:$0xff] }
  0xbb   :  { %v339_v33 = vmul.f32 %v2240_v48, %v210_v27  ;;  %v412_v34 = vmul.f32 %v2246_v52, %v210_v27  ;;  %v340_v36 = vmul.f32 %v2240_v48, %v215_v26  ;;  %v413_v37 = vmul.f32 %v2246_v52, %v215_v26  ;;  %v1176_v26 = vld [vmem:[%s2720_s5] sm:$0xff]  ;;  %v1177_v27 = vld [vmem:[%s2720_s5 + $0x8] sm:$0xff] }
  0xbc   :  { %668 = vmatmul.mubr.f32.gmra.mrb[20].mxu0 %v491_v8  ;;  %v443_v38 = vadd.f32 %v411_v23, %v369_v24  ;;  %v299_v39 = vadd.f32 %v2235_v47, %v260_v29  ;;  %v298_v40 = vadd.f32 %v2235_v47, %v259_v32  ;;  %v493_v42 = vmax.f32 %v472_v31, %v473_v35  ;;  %v1209_v23 = vld [vmem:[%s2720_s5 + $0x108] sm:$0xff]  ;;  %v1178_v31 = vld [vmem:[%s2720_s5 + $0x10] sm:$0xff]  ;;  %v1179_v32 = vld [vmem:[%s2720_s5 + $0x18] sm:$0xff] }
  0xbd   :  { %v371_v41 = vadd.f32 %v339_v33, %v297_v22  ;;  %v225_v44 = vpop.permute.xlu1 %224  ;;  %v220_v45 = vpop.permute.xlu0 %219  ;;  %v444_v49 = vadd.f32 %v412_v34, %v370_v30  ;;  %v474_v53 = vmax.f32 %v442_v28, 0.0  ;;  %v1208_v22 = vld [vmem:[%s2720_s5 + $0x100] sm:$0xff]  ;;  %v1828_v24 = vpack.c.bf16 %v1193_v21, %v1192_v19  ;;  %v1194_v28 = vld [vmem:[%s2720_s5 + $0x90] sm:$0xff]  ;;  %v1195_v30 = vld [vmem:[%s2720_s5 + $0x98] sm:$0xff] }
  0xbe   :  { %v262_v50 = vmul.f32 %v2229_v43, %v225_v44  ;;  %v261_v51 = vmul.f32 %v2229_v43, %v220_v45  ;;  %672 = vmatprep.mubr.f32.mxu0 %v493_v42  ;;  %1736 = vmatprep.mubr.f32.mxu1 %v493_v42  ;;  %v372_v54 = vadd.f32 %v340_v36, %v298_v40  ;;  %v475_v57 = vmax.f32 %v443_v38, 0.0  ;;  %v1226_v34 = vld [vmem:[%s2720_s5 + $0x190] sm:$0xff]  ;;  %v1227_v35 = vld [vmem:[%s2720_s5 + $0x198] sm:$0xff]  ;;  %v1196_v36 = vld [vmem:[%s2720_s5 + $0xa0] sm:$0xff] }
  0xbf   :  { %v341_v55 = vmul.f32 %v2240_v48, %v220_v45  ;;  %v414_v56 = vmul.f32 %v2246_v52, %v220_v45  ;;  %v342_v58 = vmul.f32 %v2240_v48, %v225_v44  ;;  %v445_v60 = vadd.f32 %v413_v37, %v371_v41  ;;  %1829 = vmatprep.subr.bf16.mxu1 %v1828_v24  ;;  %v1210_v40 = vld [vmem:[%s2720_s5 + $0x110] sm:$0xff]  ;;  %v1211_v41 = vld [vmem:[%s2720_s5 + $0x118] sm:$0xff]  ;;  %v1180_v45 = vld [vmem:[%s2720_s5 + $0x20] sm:$0xff] }
  0xc0   :  { %v300_v59 = vadd.f32 %v2235_v47, %v261_v51  ;;  %673 = vmatmul.mubr.f32.gmra.mrb[22].mxu0 %v492_v25  ;;  %v415_v61 = vmul.f32 %v2246_v52, %v225_v44  ;;  %v494_v43 = vmax.f32 %v474_v53, %v475_v57  ;;  %v301_v2 = vadd.f32 %v2235_v47, %v262_v50  ;;  %v1198_v50 = vld [vmem:[%s2720_s5 + $0xb0] sm:$0xff]  ;;  %v1199_v51 = vld [vmem:[%s2720_s5 + $0xb8] sm:$0xff]  ;;  %v1228_v53 = vld [vmem:[%s2720_s5 + $0x1a0] sm:$0xff] }
  0xc1   :  { %v373_v62 = vadd.f32 %v341_v55, %v299_v39  ;;  %v446_v63 = vadd.f32 %v414_v56, %v372_v54  ;;  %v380_v0 = vpop.permute.xlu1 %379  ;;  %v306_v1 = vpop.permute.xlu0 %305  ;;  %v476_v6 = vmax.f32 %v444_v49, 0.0  ;;  %v477_v7 = vmax.f32 %v445_v60, 0.0  ;;  %v1197_v39 = vld [vmem:[%s2720_s5 + $0xa8] sm:$0xff]  ;;  %v1212_v57 = vld [vmem:[%s2720_s5 + $0x120] sm:$0xff]  ;;  %v1182_v60 = vld [vmem:[%s2720_s5 + $0x30] sm:$0xff] }
  0xc2   :  { %v374_v3 = vadd.f32 %v342_v58, %v300_v59  ;;  %v343_v4 = vmul.f32 %v2240_v48, %v306_v1  ;;  %v416_v5 = vmul.f32 %v2246_v52, %v306_v1  ;;  %677 = vmatprep.mubr.f32.mxu0 %v494_v43  ;;  %1737 = vmatmul.mubr.f32.gmra.mrb[10].mxu1 %v494_v43  ;;  %v1181_v49 = vld [vmem:[%s2720_s5 + $0x28] sm:$0xff]  ;;  %v1231_v1 = vld [vmem:[%s2720_s5 + $0x1b8] sm:$0xff] }
  0xc3   :  { %v447_v8 = vadd.f32 %v415_v61, %v373_v62  ;;  %v417_v9 = vmul.f32 %v2246_v52, %v380_v0  ;;  %v495_v12 = vmax.f32 %v476_v6, %v477_v7  ;;  %v478_v13 = vmax.f32 %v446_v63, 0.0  ;;  %v1224_v52 = vld [vmem:[%s2720_s5 + $0x180] sm:$0xff]  ;;  %v1229_v54 = vld [vmem:[%s2720_s5 + $0x1a8] sm:$0xff]  ;;  %v1183_v61 = vld [vmem:[%s2720_s5 + $0x38] sm:$0xff] }
  0xc4   :  { %v375_v10 = vadd.f32 %v343_v4, %v301_v2  ;;  %v448_v11 = vadd.f32 %v416_v5, %v374_v3  ;;  %678 = vmatmul.mubr.f32.gmra.mrb[24].mxu0 %v493_v42  ;;  %v1860_v20 = vpack.c.bf16 %v1225_v18, %v1224_v52  ;;  %v1862_v25 = vpack.c.bf16 %v1209_v23, %v1208_v22  ;;  %v1213_v58 = vld [vmem:[%s2720_s5 + $0x128] sm:$0xff]  ;;  %v1200_v63 = vld [vmem:[%s2720_s5 + $0xc0] sm:$0xff]  ;;  %v1230_v0 = vld [vmem:[%s2720_s5 + $0x1b0] sm:$0xff] }
  0xc5   :  { %v479_v14 = vmax.f32 %v447_v8, 0.0  ;;  %682 = vmatprep.mubr.f32.mxu0 %v495_v12  ;;  %1739 = vmatprep.mubr.f32.mxu1 %v495_v12  ;;  %v1830_v29 = vpack.c.bf16 %v1177_v27, %v1176_v26  ;;  %v1832_v33 = vpack.c.bf16 %v1195_v30, %v1194_v28  ;;  %v1834_v37 = vpack.c.bf16 %v1179_v32, %v1178_v31  ;;  %v1214_v4 = vld [vmem:[%s2720_s5 + $0x130] sm:$0xff]  ;;  %v1215_v5 = vld [vmem:[%s2720_s5 + $0x138] sm:$0xff]  ;;  %v1184_v7 = vld [vmem:[%s2720_s5 + $0x40] sm:$0xff] }
  0xc6   :  { %v449_v15 = vadd.f32 %v417_v9, %v375_v10  ;;  %v480_v48 = vmax.f32 %v448_v11, 0.0  ;;  %1861 = vmatprep.subr.bf16.mxu0 %v1860_v20  ;;  %v1864_v38 = vpack.c.bf16 %v1227_v35, %v1226_v34  ;;  %v1836_v42 = vpack.c.bf16 %v1197_v39, %v1196_v36  ;;  %v1185_v8 = vld [vmem:[%s2720_s5 + $0x48] sm:$0xff]  ;;  %v1202_v10 = vld [vmem:[%s2720_s5 + $0xd0] sm:$0xff]  ;;  %v1203_v11 = vld [vmem:[%s2720_s5 + $0xd8] sm:$0xff] }
  0xc7   :  { %v496_v47 = vmax.f32 %v478_v13, %v479_v14  ;;  %1863 = vmatpush3.bf16.msra.mxu0 %v1862_v25  ;;  %1831 = vmatpush3.bf16.msra.mxu1 %v1830_v29  ;;  %v1866_v44 = vpack.c.bf16 %v1211_v41, %v1210_v40  ;;  %v1838_v55 = vpack.c.bf16 %v1181_v49, %v1180_v45  ;;  %v1186_v14 = vld [vmem:[%s2720_s5 + $0x50] sm:$0xff]  ;;  %v1188_v52 = vld [vmem:[%s2720_s5 + $0x60] sm:$0xff]  ;;  %v1189_v18 = vld [vmem:[%s2720_s5 + $0x68] sm:$0xff] }
  0xc8   :  { %683 = vmatmul.mubr.f32.gmra.mrb[26].mxu0 %v494_v43  ;;  %v481_v16 = vmax.f32 %v449_v15, 0.0  ;;  %1833 = vmatprep.subr.bf16.mxu1 %v1832_v33  ;;  %v1868_v56 = vpack.c.bf16 %v1229_v54, %v1228_v53  ;;  %v1840_v59 = vpack.c.bf16 %v1199_v51, %v1198_v50  ;;  %v1870_v62 = vpack.c.bf16 %v1213_v58, %v1212_v57  ;;  %v1201_v43 = vld [vmem:[%s2720_s5 + $0xc8] sm:$0xff]  ;;  %v1187_v15 = vld [vmem:[%s2720_s5 + $0x58] sm:$0xff]  ;;  %v2511_v23 = vld [vmem:[%s2721_s4] ss:$0 sm:$0xff] }
  0xc9   :  { %687 = vmatprep.mubr.f32.mxu0 %v496_v47  ;;  %1740 = vmatmul.mubr.f32.gmra.mrb[12].mxu1 %v496_v47  ;;  %v1842_v2 = vpack.c.bf16 %v1183_v61, %v1182_v60  ;;  %v1872_v3 = vpack.c.bf16 %v1231_v1, %v1230_v0  ;;  %v1844_v6 = vpack.c.bf16 %v1201_v43, %v1200_v63 }
  0xca   :  { %v497_v17 = vmax.f32 %v480_v48, %v481_v16  ;;  %1865 = vmatprep.subr.bf16.mxu0 %v1864_v38  ;;  %v1874_v9 = vpack.c.bf16 %v1215_v5, %v1214_v4  ;;  %v1848_v13 = vpack.c.bf16 %v1203_v11, %v1202_v10  ;;  %v1205_v48 = vld [vmem:[%s2720_s5 + $0xe8] sm:$0xff]  ;;  %v1850_v16 = vpack.c.bf16 %v1187_v15, %v1186_v14 }
  0xcb   :  { %1867 = vmatpush3.bf16.msra.mxu0 %v1866_v44  ;;  %1835 = vmatpush3.bf16.msra.mxu1 %v1834_v37  ;;  %v1854_v19 = vpack.c.bf16 %v1189_v18, %v1188_v52  ;;  %v889_v15 = vlaneseq }
  0xcc   :  { %688 = vmatmul.mubr.f32.gmra.mrb[28].mxu0 %v495_v12  ;;  %1742 = vmatprep.mubr.f32.mxu1 %v497_v17  ;;  %v1846_v12 = vpack.c.bf16 %v1185_v8, %v1184_v7 }
  0xcd   :  { %692 = vmatprep.mubr.f32.mxu0 %v497_v17  ;;  %1743 = vmatmul.mubr.f32.gmra.mrb[14].mxu1 %v1924_v46 }
  0xce   :  { %1837 = vmatprep.subr.bf16.mxu1 %v1836_v42  ;;  %1869 = vmatprep.subr.bf16.mxu0 %v1868_v56 }
  0xcf   :  { %1871 = vmatpush3.bf16.msra.mxu0 %v1870_v62  ;;  %1839 = vmatpush3.bf16.msra.mxu1 %v1838_v55 }
  0xd0   :  { %693 = vmatmul.mubr.f32.gmra.mrb[30].mxu0 %v496_v47  ;;  %1841 = vmatprep.subr.bf16.mxu1 %v1840_v59  ;;  %v1204_v47 = vld [vmem:[%s2720_s5 + $0xe0] sm:$0xff] }
  0xd1   :  { %1873 = vmatprep.subr.bf16.mxu0 %v1872_v3  ;;  %v1852_v17 = vpack.c.bf16 %v1205_v48, %v1204_v47 }
  0xd3   :  { %1875 = vmatpush3.bf16.msra.mxu0 %v1874_v9  ;;  %1843 = vmatpush3.bf16.msra.mxu1 %v1842_v2 }
  0xd4   :  { %1845 = vmatprep.subr.bf16.mxu1 %v1844_v6 }
  0xd7   :  { %1847 = vmatpush3.bf16.msra.mxu1 %v1846_v12  ;;  %v1925_v12 = vmov 1983009808  }
  0xd8   :  { %1849 = vmatprep.subr.bf16.mxu1 %v1848_v13  ;;  %v887_v13 = vunpack.c.l.s4 %v1925_v12 }
  0xdb   :  { %1851 = vmatpush3.bf16.msra.mxu1 %v1850_v16 }
  0xdc   :  { %1853 = vmatprep.subr.bf16.mxu1 %v1852_v17 }
  0xdf   :  { %1855 = vmatpush3.bf16.msra.mxu1 %v1854_v19 }
 0x167   :  { %v1530_v20 = vpop.f32.mrb[0].mxu0 }
 0x168   :  { %v1531_v21 = vpop.f32.mrb[1].mxu0 }
 0x169   :  { %v1532_v22 = vadd.f32 %v1531_v21, %v1530_v20  ;;  %v888_v20 = vunpack.c.0.s8 %v887_v13 }
 0x16b   :  { %v1533_v24 = vpop.f32.mrb[2].mxu0  ;;  %v620_v26 = vadd.f32 %v1532_v22, %v2511_v23 }
 0x16c   :  { %v1534_v25 = vpop.f32.mrb[3].mxu0 }
 0x16d   :  { %v1535_v27 = vadd.f32 %v1534_v25, %v1533_v24  ;;  %v1723_v28 = vpop.f32.mrb[0].mxu1 }
 0x16e   :  { %v764_v30 = vpop.f32.mrb[1].mxu1 }
 0x16f   :  { %v625_v29 = vadd.f32 %v1535_v27, %v2511_v23  ;;  %v1536_v31 = vpop.f32.mrb[4].mxu0  ;;  %v765_v32 = vadd.f32 %v764_v30, %v620_v26  ;;  %v890_v27 = vshrl.u32 %v889_v15, 7 }
 0x170   :  { %v1537_v33 = vpop.f32.mrb[5].mxu0 }
 0x171   :  { %v770_v34 = vadd.f32 %v1723_v28, %v625_v29  ;;  %v1538_v35 = vadd.f32 %v1537_v33, %v1536_v31  ;;  %v843_v36 = vmax.f32 %v765_v32, 0.0  ;;  %v1926_v31 = vmov 1934713408  }
 0x172   :  { %v951_v32 = vunpack.c.l.s4 %v1926_v31 }
 0x173   :  { %v844_v37 = vmax.f32 %v770_v34, 0.0  ;;  %v1539_v38 = vpop.f32.mrb[6].mxu0  ;;  %v630_v40 = vadd.f32 %v1538_v35, %v2511_v23  ;;  %v860_v42 = vsel %vm859_vm0, %v843_v36, -inf }
 0x174   :  { %v1540_v39 = vpop.f32.mrb[7].mxu0 }
 0x175   :  { %v861_v41 = vsel %vm859_vm0, %v844_v37, -inf  ;;  %v1541_v44 = vadd.f32 %v1540_v39, %v1539_v38  ;;  %v1726_v49 = vpop.f32.mrb[2].mxu1  ;;  %v2531_v37 = vsub.s32 %v888_v20, %v890_v27 }
 0x176   :  { %v2518_v45 = vmax.f32 %v860_v42, %v861_v41  ;;  %v774_v51 = vpop.f32.mrb[3].mxu1  ;;  %v952_v42 = vunpack.c.0.s8 %v951_v32 }
 0x177   :  { %v635_v50 = vadd.f32 %v1541_v44, %v2511_v23  ;;  %v1542_v53 = vpop.f32.mrb[8].mxu0  ;;  %v775_v54 = vadd.f32 %v774_v51, %v630_v40 }
 0x178   :  { %v1543_v55 = vpop.f32.mrb[9].mxu0 }
 0x179   :  { %v780_v56 = vadd.f32 %v1726_v49, %v635_v50  ;;  %v1544_v57 = vadd.f32 %v1543_v55, %v1542_v53  ;;  %v845_v58 = vmax.f32 %v775_v54, 0.0 }
 0x17b   :  { %v846_v59 = vmax.f32 %v780_v56, 0.0  ;;  %v1545_v60 = vpop.f32.mrb[10].mxu0  ;;  %v640_v62 = vadd.f32 %v1544_v57, %v2511_v23  ;;  %v863_v43 = vsel %vm859_vm0, %v845_v58, -inf }
 0x17c   :  { %v1546_v61 = vpop.f32.mrb[11].mxu0 }
 0x17d   :  { %v864_v63 = vsel %vm859_vm0, %v846_v59, -inf  ;;  %v1547_v0 = vadd.f32 %v1546_v61, %v1545_v60  ;;  %v1729_v2 = vpop.f32.mrb[4].mxu1  ;;  %v2538_v59 = vsub.s32 %v952_v42, %v890_v27  ;;  %v1191_v27 = vld [vmem:[%s2720_s5 + $0x78] sm:$0xff]  ;;  %v1232_v42 = vld [vmem:[%s2720_s5 + $0x1c0] sm:$0xff] }
 0x17e   :  { %v865_v1 = vmax.f32 %v863_v43, %v864_v63  ;;  %v784_v4 = vpop.f32.mrb[5].mxu1 }
 0x17f   :  { %v645_v3 = vadd.f32 %v1547_v0, %v2511_v23  ;;  %v1548_v5 = vpop.f32.mrb[12].mxu0  ;;  %v785_v6 = vadd.f32 %v784_v4, %v640_v62 }
 0x180   :  { %v1549_v7 = vpop.f32.mrb[13].mxu0 }
 0x181   :  { %v790_v8 = vadd.f32 %v1729_v2, %v645_v3  ;;  %v1550_v9 = vadd.f32 %v1549_v7, %v1548_v5  ;;  %v847_v10 = vmax.f32 %v785_v6, 0.0 }
 0x183   :  { %v848_v11 = vmax.f32 %v790_v8, 0.0  ;;  %v1551_v14 = vpop.f32.mrb[14].mxu0  ;;  %v650_v48 = vadd.f32 %v1550_v9, %v2511_v23  ;;  %v866_v17 = vsel %vm859_vm0, %v847_v10, -inf }
 0x184   :  { %v1552_v47 = vpop.f32.mrb[15].mxu0 }
 0x185   :  { %v867_v16 = vsel %vm859_vm0, %v848_v11, -inf  ;;  %v1553_v52 = vadd.f32 %v1552_v47, %v1551_v14  ;;  %v1732_v19 = vpop.f32.mrb[6].mxu1 }
 0x186   :  { %v868_v18 = vmax.f32 %v866_v17, %v867_v16  ;;  %v794_v22 = vpop.f32.mrb[7].mxu1 }
 0x187   :  { %v655_v21 = vadd.f32 %v1553_v52, %v2511_v23  ;;  %v1554_v24 = vpop.f32.mrb[16].mxu0  ;;  %v795_v28 = vadd.f32 %v794_v22, %v650_v48 }
 0x188   :  { %v884_v25 = vcombine.low %v2518_v45, %v868_v18  ;;  %v885_v26 = vcombine.high %v2518_v45, %v868_v18  ;;  %v1555_v29 = vpop.f32.mrb[17].mxu0  ;;  %v1206_v18 = vld [vmem:[%s2720_s5 + $0xf0] sm:$0xff] }
 0x189   :  { %v800_v30 = vadd.f32 %v1732_v19, %v655_v21  ;;  %v1556_v33 = vadd.f32 %v1555_v29, %v1554_v24  ;;  %v849_v34 = vmax.f32 %v795_v28, 0.0  ;;  %v1207_v19 = vld [vmem:[%s2720_s5 + $0xf8] sm:$0xff] }
 0x18a   :  { %v892_v58 = vrot.slane %v884_v25, %v2531_v37  ;;  %v899_v62 = vrot.slane %v885_v26, %v2531_v37  ;;  %v1190_v26 = vld [vmem:[%s2720_s5 + $0x70] sm:$0xff]  ;;  %v1856_v31 = vpack.c.bf16 %v1207_v19, %v1206_v18 }
 0x18b   :  { %v850_v35 = vmax.f32 %v800_v30, 0.0  ;;  %v1557_v36 = vpop.f32.mrb[18].mxu0  ;;  %v660_v39 = vadd.f32 %v1556_v33, %v2511_v23  ;;  %v869_v41 = vsel %vm859_vm0, %v849_v34, -inf }
 0x18c   :  { %v1558_v38 = vpop.f32.mrb[19].mxu0  ;;  %1857 = vmatprep.subr.bf16.mxu1 %v1856_v31  ;;  %v1238_v31 = vld [vmem:[%s2720_s5 + $0x1f0] sm:$0xff] }
 0x18d   :  { %v870_v40 = vsel %vm859_vm0, %v850_v35, -inf  ;;  %v1559_v44 = vadd.f32 %v1558_v38, %v1557_v36  ;;  %v1735_v49 = vpop.f32.mrb[8].mxu1 }
 0x18e   :  { %v871_v45 = vmax.f32 %v869_v41, %v870_v40  ;;  %v804_v51 = vpop.f32.mrb[9].mxu1  ;;  %v1858_v41 = vpack.c.bf16 %v1191_v27, %v1190_v26  ;;  %v1221_v26 = vld [vmem:[%s2720_s5 + $0x168] sm:$0xff] }
 0x18f   :  { %v665_v50 = vadd.f32 %v1559_v44, %v2511_v23  ;;  %v1560_v53 = vpop.f32.mrb[20].mxu0  ;;  %v805_v56 = vadd.f32 %v804_v51, %v660_v39  ;;  %v1233_v44 = vld [vmem:[%s2720_s5 + $0x1c8] sm:$0xff] }
 0x190   :  { %v900_v54 = vcombine.low %v865_v1, %v871_v45  ;;  %v901_v55 = vcombine.high %v865_v1, %v871_v45  ;;  %v1561_v57 = vpop.f32.mrb[21].mxu0  ;;  %1859 = vmatpush3.bf16.msra.mxu1 %v1858_v41 }
 0x191   :  { %v810_v60 = vadd.f32 %v1735_v49, %v665_v50  ;;  %v1562_v61 = vadd.f32 %v1561_v57, %v1560_v53  ;;  %v851_v0 = vmax.f32 %v805_v56, 0.0  ;;  %v1217_v56 = vld [vmem:[%s2720_s5 + $0x148] sm:$0xff]  ;;  %v1234_v57 = vld [vmem:[%s2720_s5 + $0x1d0] sm:$0xff] }
 0x192   :  { %v908_v63 = vrot.slane %v900_v54, %v2531_v37  ;;  %v915_v43 = vrot.slane %v901_v55, %v2531_v37  ;;  %v1876_v54 = vpack.c.bf16 %v1233_v44, %v1232_v42  ;;  %v1216_v55 = vld [vmem:[%s2720_s5 + $0x140] sm:$0xff]  ;;  %v1222_v42 = vld [vmem:[%s2720_s5 + $0x170] sm:$0xff]  ;;  %v1223_v44 = vld [vmem:[%s2720_s5 + $0x178] sm:$0xff] }
 0x193   :  { %v852_v2 = vmax.f32 %v810_v60, 0.0  ;;  %v1563_v3 = vpop.f32.mrb[22].mxu0  ;;  %v670_v4 = vadd.f32 %v1562_v61, %v2511_v23  ;;  %v872_v10 = vsel %vm859_vm0, %v851_v0, -inf  ;;  %v1218_v0 = vld [vmem:[%s2720_s5 + $0x150] sm:$0xff] }
 0x194   :  { %v948_v1 = vcombine.low %v892_v58, %v908_v63  ;;  %v949_v5 = vcombine.high %v892_v58, %v908_v63  ;;  %v964_v6 = vcombine.low %v899_v62, %v915_v43  ;;  %v965_v7 = vcombine.high %v899_v62, %v915_v43  ;;  %v1564_v8 = vpop.f32.mrb[23].mxu0  ;;  %v1235_v43 = vld [vmem:[%s2720_s5 + $0x1d8] sm:$0xff]  ;;  %1877 = vmatprep.subr.bf16.mxu0 %v1876_v54 }
 0x195   :  { %v873_v9 = vsel %vm859_vm0, %v852_v2, -inf  ;;  %v1565_v11 = vadd.f32 %v1564_v8, %v1563_v3  ;;  %v1738_v47 = vpop.f32.mrb[10].mxu1  ;;  %v1219_v2 = vld [vmem:[%s2720_s5 + $0x158] sm:$0xff]  ;;  %v1890_v54 = vpack.c.bf16 %v1223_v44, %v1222_v42  ;;  %v1928_v42 = vmov 0.0|0.0   ;;  %v1392_v44 = vld [vmem:[%s2722_s7 + $0x20] sm:$0xff] }
 0x196   :  { %v956_v12 = vrot.slane %v948_v1, %v2538_v59  ;;  %v963_v13 = vrot.slane %v949_v5, %v2538_v59  ;;  %v972_v14 = vrot.slane %v964_v6, %v2538_v59  ;;  %v979_v15 = vrot.slane %v965_v7, %v2538_v59  ;;  %v814_v17 = vpop.f32.mrb[11].mxu1  ;;  %1892 = vmatprep.subr.bf16.mxu1 %v1928_v42 }
 0x197   :  { %v2550_v48 = vmax.f32 %v872_v10, %v873_v9  ;;  %v675_v16 = vadd.f32 %v1565_v11, %v2511_v23  ;;  %v1566_v52 = vpop.f32.mrb[24].mxu0  ;;  %v815_v20 = vadd.f32 %v814_v17, %v670_v4  ;;  %v1878_v10 = vpack.c.bf16 %v1217_v56, %v1216_v55  ;;  %v1236_v11 = vld [vmem:[%s2720_s5 + $0x1e0] sm:$0xff] }
 0x198   :  { %v1567_v21 = vpop.f32.mrb[25].mxu0  ;;  %v1487_v22 = vcombine.low %v956_v12, %v963_v13  ;;  %v1489_v24 = vcombine.high %v956_v12, %v963_v13  ;;  %v1491_v25 = vcombine.low %v972_v14, %v979_v15  ;;  %v1493_v30 = vcombine.high %v972_v14, %v979_v15  ;;  %v1237_v12 = vld [vmem:[%s2720_s5 + $0x1e8] sm:$0xff] }
 0x199   :  { %v820_v28 = vadd.f32 %v1738_v47, %v675_v16  ;;  %v1568_v29 = vadd.f32 %v1567_v21, %v1566_v52  ;;  %v853_v32 = vmax.f32 %v815_v20, 0.0  ;;  %v1880_v47 = vpack.c.bf16 %v1235_v43, %v1234_v57  ;;  %1879 = vmatpush3.bf16.msra.mxu0 %v1878_v10 }
 0x19a   :  { %v1028_v33 = vrot.slane %v1487_v22, %v2531_v37  ;;  %v1044_v34 = vrot.slane %v1489_v24, %v2531_v37  ;;  %v1060_v35 = vrot.slane %v1491_v25, %v2531_v37  ;;  %v1076_v40 = vrot.slane %v1493_v30, %v2531_v37  ;;  %v1220_v25 = vld [vmem:[%s2720_s5 + $0x160] sm:$0xff] }
 0x19b   :  { %v854_v36 = vmax.f32 %v820_v28, 0.0  ;;  %v1569_v38 = vpop.f32.mrb[26].mxu0  ;;  %v680_v39 = vadd.f32 %v1568_v29, %v2511_v23  ;;  %v875_v45 = vsel %vm859_vm0, %v853_v32, -inf  ;;  %v1882_v16 = vpack.c.bf16 %v1219_v2, %v1218_v0  ;;  %1881 = vmatprep.subr.bf16.mxu0 %v1880_v47  ;;  %v1239_v32 = vld [vmem:[%s2720_s5 + $0x1f8] sm:$0xff] }
 0x19c   :  { %v1570_v49 = vpop.f32.mrb[27].mxu0  ;;  %v1741_v50 = vpop.f32.mrb[12].mxu1  ;;  %v1084_v51 = vcombine.low %v1028_v33, %v1044_v34  ;;  %v1085_v53 = vcombine.high %v1028_v33, %v1044_v34  ;;  %v1116_v62 = vcombine.low %v1060_v35, %v1076_v40  ;;  %v1117_v63 = vcombine.high %v1060_v35, %v1076_v40 }
 0x19d   :  { %v876_v58 = vsel %vm859_vm0, %v854_v36, -inf  ;;  %v1571_v60 = vadd.f32 %v1570_v49, %v1569_v38  ;;  %v824_v61 = vpop.f32.mrb[13].mxu1  ;;  %v1884_v24 = vpack.c.bf16 %v1237_v12, %v1236_v11  ;;  %1883 = vmatpush3.bf16.msra.mxu0 %v1882_v16  ;;  %v1888_v41 = vpack.c.bf16 %v1239_v32, %v1238_v31 }
 0x19e   :  { %v2596_v3 = vmax.f32 %v875_v45, %v876_v58  ;;  %v825_v4 = vadd.f32 %v824_v61, %v680_v39  ;;  %v2599_v1 = vrot.slane %v1084_v51, %v2538_v59  ;;  %v2602_v5 = vrot.slane %v1085_v53, %v2538_v59 }
 0x19f   :  { %v685_v6 = vadd.f32 %v1571_v60, %v2511_v23  ;;  %v1572_v7 = vpop.f32.mrb[28].mxu0  ;;  %v2606_v8 = vrot.slane %v1116_v62, %v2538_v59  ;;  %v2609_v9 = vrot.slane %v1117_v63, %v2538_v59  ;;  %v1886_v39 = vpack.c.bf16 %v1221_v26, %v1220_v25  ;;  %1885 = vmatprep.subr.bf16.mxu0 %v1884_v24 }
 0x1a0   :  { %v855_v13 = vmax.f32 %v825_v4, 0.0  ;;  %v1573_v14 = vpop.f32.mrb[29].mxu0  ;;  %v1744_v15 = vpop.f32.mrb[14].mxu1 }
 0x1a1   :  { %v830_v17 = vadd.f32 %v1741_v50, %v685_v6  ;;  %v1574_v52 = vadd.f32 %v1573_v14, %v1572_v7  ;;  %v1149_v18 = vcombine.high %v2599_v1, %v2606_v8  ;;  %v1151_v19 = vcombine.high %v2602_v5, %v2609_v9  ;;  %v834_v20 = vpop.f32.mrb[15].mxu1  ;;  %1887 = vmatpush3.bf16.msra.mxu0 %v1886_v39 }
 0x1a2   :  { %v1148_v21 = vcombine.low %v2599_v1, %v2606_v8  ;;  %v1150_v22 = vcombine.low %v2602_v5, %v2609_v9  ;;  %v878_v33 = vsel %vm859_vm0, %v855_v13, -inf  ;;  %1889 = vmatprep.subr.bf16.mxu0 %v1888_v41  ;;  %v1388_v1 = vld [vmem:[%s2722_s7] sm:$0xff]  ;;  %v1389_v5 = vld [vmem:[%s2722_s7 + $0x8] sm:$0xff]  ;;  %v1390_v8 = vld [vmem:[%s2722_s7 + $0x10] sm:$0xff] }
 0x1a3   :  { %v856_v27 = vmax.f32 %v830_v17, 0.0  ;;  %v1575_v28 = vpop.f32.mrb[30].mxu0  ;;  %v1913_v29 = vpack.i.bf16 %v1149_v18, %v1151_v19  ;;  %v690_v30 = vadd.f32 %v1574_v52, %v2511_v23  ;;  %v1893_v9 = vpack.c.bf16 %v1389_v5, %v1388_v1 }
 0x1a4   :  { %v1576_v34 = vpop.f32.mrb[31].mxu0 }
 0x1a5   :  { %v879_v35 = vsel %vm859_vm0, %v856_v27, -inf  ;;  %1914 = vrot.lane.b32.xlu0 %v1913_v29, %s1927_s30  ;;  %v1577_v36 = vadd.f32 %v1576_v34, %v1575_v28  ;;  %v835_v38 = vadd.f32 %v834_v20, %v690_v30  ;;  %1891 = vmatpush3.bf16.msra.mxu0 %v1890_v54 }
 0x1a6   :  { %v880_v40 = vmax.f32 %v878_v33, %v879_v35 }
 0x1a7   :  { %v695_v45 = vadd.f32 %v1577_v36, %v2511_v23  ;;  %v857_v53 = vmax.f32 %v835_v38, 0.0 }
 0x1a8   :  { %v916_v49 = vcombine.low %v2550_v48, %v880_v40  ;;  %v917_v50 = vcombine.high %v2550_v48, %v880_v40 }
 0x1a9   :  { %v840_v51 = vadd.f32 %v1744_v15, %v695_v45  ;;  %v881_v56 = vsel %vm859_vm0, %v857_v53, -inf  ;;  %v1393_v45 = vld [vmem:[%s2722_s7 + $0x28] sm:$0xff] }
 0x1aa   :  { %v924_v61 = vrot.slane %v916_v49, %v2531_v37  ;;  %v931_v48 = vrot.slane %v917_v50, %v2531_v37  ;;  %v1899_v49 = vpack.c.bf16 %v1393_v45, %v1392_v44  ;;  %v1394_v50 = vld [vmem:[%s2722_s7 + $0x30] sm:$0xff] }
 0x1ab   :  { %v858_v55 = vmax.f32 %v840_v51, 0.0  ;;  %v1395_v51 = vld [vmem:[%s2722_s7 + $0x38] sm:$0xff] }
 0x1ac   :  { %v1902_v53 = vpack.c.bf16 %v1395_v51, %v1394_v50 }
 0x1ad   :  { %v882_v57 = vsel %vm859_vm0, %v858_v55, -inf }
 0x1ae   :  { %v883_v58 = vmax.f32 %v881_v56, %v882_v57  ;;  %v1495_v57 = vld [vmem:[%s2723_s6] ss:$0 sm:$0xff] }
 0x1b0   :  { %v932_v60 = vcombine.low %v2596_v3, %v883_v58  ;;  %v933_v23 = vcombine.high %v2596_v3, %v883_v58 }
 0x1b2   :  { %v940_v62 = vrot.slane %v932_v60, %v2531_v37  ;;  %v947_v63 = vrot.slane %v933_v23, %v2531_v37 }
 0x1b4   :  { %v980_v43 = vcombine.low %v924_v61, %v940_v62  ;;  %v981_v0 = vcombine.high %v924_v61, %v940_v62  ;;  %v996_v2 = vcombine.low %v931_v48, %v947_v63  ;;  %v997_v4 = vcombine.high %v931_v48, %v947_v63 }
 0x1b6   :  { %v988_v6 = vrot.slane %v980_v43, %v2538_v59  ;;  %v995_v7 = vrot.slane %v981_v0, %v2538_v59  ;;  %v1004_v10 = vrot.slane %v996_v2, %v2538_v59  ;;  %v1011_v3 = vrot.slane %v997_v4, %v2538_v59 }
 0x1b8   :  { %v1488_v11 = vcombine.low %v988_v6, %v995_v7  ;;  %v1490_v12 = vcombine.high %v988_v6, %v995_v7  ;;  %v1492_v13 = vcombine.low %v1004_v10, %v1011_v3  ;;  %v1494_v14 = vcombine.high %v1004_v10, %v1011_v3 }
 0x1ba   :  { %v1035_v15 = vrot.slane %v1488_v11, %v2531_v37  ;;  %v1051_v47 = vrot.slane %v1490_v12, %v2531_v37  ;;  %v1067_v16 = vrot.slane %v1492_v13, %v2531_v37  ;;  %v1083_v17 = vrot.slane %v1494_v14, %v2531_v37 }
 0x1bc   :  { %v1100_v52 = vcombine.low %v1035_v15, %v1051_v47  ;;  %v1101_v18 = vcombine.high %v1035_v15, %v1051_v47  ;;  %v1132_v19 = vcombine.low %v1067_v16, %v1083_v17  ;;  %v1133_v20 = vcombine.high %v1067_v16, %v1083_v17 }
 0x1be   :  { %v1108_v24 = vrot.slane %v1100_v52, %v2538_v59  ;;  %v1115_v25 = vrot.slane %v1101_v18, %v2538_v59  ;;  %v1140_v26 = vrot.slane %v1132_v19, %v2538_v59  ;;  %v1147_v27 = vrot.slane %v1133_v20, %v2538_v59 }
 0x1c0   :  { %v1153_v28 = vcombine.high %v1108_v24, %v1140_v26  ;;  %v1155_v29 = vcombine.high %v1115_v25, %v1147_v27  ;;  %v1152_v30 = vcombine.low %v1108_v24, %v1140_v26  ;;  %v1154_v31 = vcombine.low %v1115_v25, %v1147_v27 }
 0x1c2   :  { %v1918_v32 = vpack.i.bf16 %v1153_v28, %v1155_v29 }
 0x1c4   :  { %1919 = vrot.lane.b32.xlu1 %v1918_v32, %s1927_s30 }
 0x217   :  { %v1915_v37 = vpop.permute.xlu0 %1914 }
 0x218   :  { %v1917_v33 = vunpack.i.h.bf16 %v1915_v37  ;;  %v1916_v34 = vunpack.i.l.bf16 %v1915_v37 }
 0x21a   :  { %v1172_v35 = vsel %vm859_vm0, %v1148_v21, %v1917_v33  ;;  %v1173_v59 = vsel %vm859_vm0, %v1150_v22, %v1916_v34  ;;  %v1391_v21 = vld [vmem:[%s2722_s7 + $0x18] sm:$0xff] }
 0x21b   :  { %1311 = vmatprep.mubr.f32.mxu1 %v1173_v59  ;;  %v1896_v22 = vpack.c.bf16 %v1391_v21, %v1390_v8 }
 0x21c   :  { %1312 = vmatmul.mubr.f32.vlgmr.msra.gmra.mrb[16].mxu1 %v1172_v35 }
 0x21d   :  { %1894 = vmatpush3.bf16.msra.mxu1 %v1893_v9  ;;  %1761 = vmatprep.mubr.msk.f32.mxu1 %vm1929_vm1, %v1924_v46  ;;  %v1496_v46 = vld [vmem:[%s2724_s8] ss:$0 sm:$0xff] }
 0x21e   :  { %1895 = vmatprep.subr.bf16.mxu1 %v1928_v42 }
 0x221   :  { %1897 = vmatpush3.bf16.msra.mxu1 %v1896_v22 }
 0x222   :  { %1898 = vmatprep.subr.bf16.mxu1 %v1928_v42 }
 0x225   :  { %1900 = vmatpush3.bf16.msra.mxu1 %v1899_v49 }
 0x226   :  { %1901 = vmatprep.subr.bf16.mxu1 %v1928_v42 }
 0x229   :  { %1903 = vmatpush3.bf16.msra.mxu1 %v1902_v53 }
 0x236   :  { %v1920_v36 = vpop.permute.xlu1 %1919 }
 0x237   :  { %v1922_v38 = vunpack.i.h.bf16 %v1920_v36  ;;  %v1921_v39 = vunpack.i.l.bf16 %v1920_v36 }
 0x239   :  { %v1174_v40 = vsel %vm859_vm0, %v1152_v30, %v1922_v38  ;;  %v1175_v41 = vsel %vm859_vm0, %v1154_v31, %v1921_v39 }
 0x23a   :  { %1381 = vmatprep.mubr.f32.mxu0 %v1175_v41 }
 0x23b   :  { %1382 = vmatmul.mubr.f32.vlgmr.msra.gmra.mrb[32].mxu0 %v1174_v40 }
 0x2ef   :  { %v1642_v54 = vpop.f32.mrb[16].mxu1 }
 0x2f0   :  { %v1643_v55 = vpop.f32.mrb[17].mxu1 }
 0x2f1   :  { %v1644_v56 = vadd.f32 %v1643_v55, %v1642_v54 }
 0x2f3   :  { %v1314_v23 = vadd.f32 %v1644_v56, %v1495_v57 }
 0x30e   :  { %v1677_v58 = vpop.f32.mrb[32].mxu0 }
 0x30f   :  { %v1678_v60 = vpop.f32.mrb[33].mxu0 }
 0x310   :  { %v1679_v61 = vadd.f32 %v1678_v60, %v1677_v58 }
 0x312   :  { %v1384_v48 = vadd.f32 %v1679_v61, %v1314_v23 }
 0x314   :  { %v1387_v62 = vmax.f32 %v1384_v48, 0.0 }
 0x316   :  { %1762 = vmatmul.mubr.msk.f32.vlgmr.msra.gmra.mrb[18].mxu1 %vm859_vm0, %v1387_v62 }
 0x3e9   :  { %v1472_v63 = vpop.f32.mrb[18].mxu1 }
 0x3ea   :  { %v1473_v43 = vadd.f32 %v1496_v46, %v1472_v63  ;;  %v1763_v0 = vpop.f32.mrb[19].mxu1 }
 0x3ec   :  { %1477 = vst.msk [vmem:[%s2725_s9] sm:$0xff] %vm1476_vm2, %v1473_v43 }

</bundles_post_ra>
